<compile_context>
chip_gen: v7x
topology: tpu7x:2x2x1
jax: 0.10.0
libtpu: 0.0.40
codegen_flags: <defaults>
</compile_context>

<pallas_src>
import functools

import jax
import jax.numpy as jnp
import numpy as np
from jax import lax
from jax.experimental import pallas as pl
from jax.experimental.pallas import tpu as pltpu


def _unroll_for(n):
    """Full unroll only for short recurrences; capped unroll (4) for long T."""
    if n <= 0:
        return 1
    return n if n <= 8 else 4


def _gate_act(gates, c, g_mask, W):
    """Fused LSTM cell nonlinearity.

    gates: (B, 4W) pre-activations laid out [i | f | g | o] (each slot W lanes wide,
    and each slot internally [small | large]); c: (B, W) with the same lane layout.
    One full-width sigmoid + one full-width tanh + a lane-mask select instead of four
    sliced activations.  The W-lane slices are contiguous lane extracts and should
    lower to XLU lane selects (co-issued with VALU), not VMEM copies.
    """
    act = jnp.where(g_mask, jnp.tanh(gates), jax.nn.sigmoid(gates))
    i = act[:, 0 * W:1 * W]
    f = act[:, 1 * W:2 * W]
    g = act[:, 2 * W:3 * W]
    o = act[:, 3 * W:4 * W]
    c_new = f * c + i * g
    h_new = o * jnp.tanh(c_new)
    return h_new, c_new


def _fused_kernel(
    # time-major flattened inputs
    sx_ref,        # (Ts*B, Ds)
    lx_ref,        # (Tl*B, Dl)
    # layer-0 input-projection weights (gate columns scattered to the fused 8H layout)
    w0x_s_ref,     # (Ds, 8H)  small-stack columns only (zeros elsewhere)
    w0x_l_ref,     # (Dl, 8H)  large-stack columns only
    b0s_ref,       # (1, 8H)
    b0l_ref,       # (1, 8H)
    # recurrent weights (block-diagonal across the two stacks)
    w0h_ref,       # (2H, 8H)  layer-0 h @ W_hh, both stacks
    w1_ref,        # (4H, 8H)  layer-1 [h0_new | h1_prev] @ [W_ih1; W_hh1], both stacks
    b1_ref,        # (1, 8H)
    # final linear
    fcw_ref,       # (2H, O_pad)
    fcb_ref,       # (1, O_pad)
    # output
    out_ref,       # (B, O_pad)
    # scratch: hoisted layer-0 projections
    xp_ref,        # (Tmax, B, 8H) f32
    *, Ts, Tl, B, H,
):
    f32 = jnp.float32
    cd = w0h_ref.dtype           # MXU operand dtype (bf16 in production, f32 for checks)
    G = 8 * H
    Tc, Tmax = min(Ts, Tl), max(Ts, Tl)

    # ---- Hoisted layer-0 input projections (off the recurrent critical path). ----
    # One batched matmul per stack, bias folded in once.  Each stack's projection only
    # occupies its own gate columns (packed weights are zero elsewhere), so combining
    # per time step is a plain add.
    s_proj = jnp.dot(sx_ref[...], w0x_s_ref[...], preferred_element_type=f32) + b0s_ref[...]
    l_proj = jnp.dot(lx_ref[...], w0x_l_ref[...], preferred_element_type=f32) + b0l_ref[...]

    # One-time relayout (T*B, 8H) -> (Tmax, B, 8H) so the per-step read is an aligned
    # leading-index load.  Static slice-stores; one-off cost off the critical path.
    # TODO(synk): for production T*B, store this scratch in bf16 or stream it over time
    # chunks (emit_pipeline) so it stays within v7x's 64 MiB VMEM.
    for t in range(Tmax):
        if t < Ts and t < Tl:
            xp_ref[t] = s_proj[t * B:(t + 1) * B, :] + l_proj[t * B:(t + 1) * B, :]
        elif t < Ts:
            xp_ref[t] = s_proj[t * B:(t + 1) * B, :]
        else:
            xp_ref[t] = l_proj[t * B:(t + 1) * B, :]

    # ---- Loop-invariants hoisted out of the recurrence. ----
    w0h = w0h_ref[...]
    w1 = w1_ref[...]
    b1 = jnp.broadcast_to(b1_ref[...], (B, G))
    lane = lax.broadcasted_iota(jnp.int32, (B, G), 1)
    g_mask = (lane >= 4 * H) & (lane < 6 * H)     # tanh lanes (the fused 'g' gate slot)

    def step(t, st, upd_mask=None):
        h0, c0, h1, c1 = st
        # Layer 0: one block-diagonal matmul for both stacks (K = 2H, N = 8H = 256).
        g0 = xp_ref[t] + jnp.dot(h0.astype(cd), w0h, preferred_element_type=f32)
        h0n, c0n = _gate_act(g0, c0, g_mask, 2 * H)
        # Layer 1: K-fused [h0_new | h1_prev] against the row-stacked block-diagonal
        # weight -> one matmul (K = 4H = 128, N = 8H = 256) instead of two + add.
        z1 = jnp.concatenate([h0n, h1], axis=1).astype(cd)
        g1 = jnp.dot(z1, w1, preferred_element_type=f32) + b1
        h1n, c1n = _gate_act(g1, c1, g_mask, 2 * H)
        if upd_mask is not None:    # freeze the finished stack's lanes (tail steps only)
            h0n = jnp.where(upd_mask, h0n, h0)
            c0n = jnp.where(upd_mask, c0n, c0)
            h1n = jnp.where(upd_mask, h1n, h1)
            c1n = jnp.where(upd_mask, c1n, c1)
        return (h0n, c0n, h1n, c1n)

    z = jnp.zeros((B, 2 * H), f32)
    st = (z, z, z, z)
    st = lax.fori_loop(0, Tc, step, st, unroll=_unroll_for(Tc))
    if Tmax > Tc:   # static tail; only traced when the two sequence lengths differ
        lane2 = lax.broadcasted_iota(jnp.int32, (B, 2 * H), 1)
        upd = (lane2 >= H) if Tl > Ts else (lane2 < H)
        st = lax.fori_loop(Tc, Tmax, lambda t, s: step(t, s, upd), st,
                           unroll=_unroll_for(Tmax - Tc))

    # Final linear over concat([small_h, large_h]): h1 is already the lane-concat
    # [small | large], so this is a single lane-dense matmul (O padded to 128 lanes).
    h1 = st[2]
    out = jnp.dot(h1.astype(cd), fcw_ref[...], preferred_element_type=f32) + fcb_ref[...]
    out_ref[...] = out.astype(out_ref.dtype)


def prepare_fused_params(params, hidden_dim, compute_dtype=jnp.bfloat16):
    """One-time packing of the LSTM/Linear params into the fused block-diagonal layout.

    Gate columns use the interleaved layout [i_s,i_l,f_s,f_l,g_s,g_l,o_s,o_l] (each slot
    H lanes wide) so the lane-concatenated [small | large] states line up with contiguous
    2H gate slices inside the kernel.  Call once at parameter-prep time, not per forward.
    """
    H = hidden_dim
    G = 8 * H
    f32 = jnp.float32
    O = params["fc_b"].shape[-1]
    O_pad = ((O + 127) // 128) * 128

    def scatter(w4h, stack):
        """(K, 4H) PyTorch-gate-order weight -> (K, 8H) fused-layout columns."""
        w4h = jnp.asarray(w4h, f32)
        K = w4h.shape[0]
        out = jnp.zeros((K, G), f32)
        for g in range(4):
            out = out.at[:, g * 2 * H + stack * H: g * 2 * H + (stack + 1) * H].set(
                w4h[:, g * H:(g + 1) * H])
        return out

    w0h = jnp.concatenate([scatter(params["s_whh0"], 0),
                           scatter(params["l_whh0"], 1)], axis=0)          # (2H, 8H)
    w1 = jnp.concatenate([scatter(params["s_wih1"], 0),
                          scatter(params["l_wih1"], 1),
                          scatter(params["s_whh1"], 0),
                          scatter(params["l_whh1"], 1)], axis=0)           # (4H, 8H)

    return {
        "w0x_s": scatter(params["s_wih0"], 0).astype(compute_dtype),       # (Ds, 8H)
        "w0x_l": scatter(params["l_wih0"], 1).astype(compute_dtype),       # (Dl, 8H)
        "b0s": scatter(params["s_b0"], 0),                                  # (1, 8H) f32
        "b0l": scatter(params["l_b0"], 1),
        "w0h": w0h.astype(compute_dtype),
        "w1": w1.astype(compute_dtype),
        "b1": scatter(params["s_b1"], 0) + scatter(params["l_b1"], 1),
        "fc_w": jnp.pad(jnp.asarray(params["fc_w"], f32),
                        ((0, 0), (0, O_pad - O))).astype(compute_dtype),   # (2H, O_pad)
        "fc_b": jnp.pad(jnp.asarray(params["fc_b"], f32),
                        ((0, 0), (0, O_pad - O))),                         # (1, O_pad)
        "out_dim": O,
        "hidden_dim": H,
        "compute_dtype": compute_dtype,
    }


def base_lstm_model_forward(small_x, large_x, fused):
    """small_x: (B, Ts, Ds), large_x: (B, Tl, Dl)  ->  (B, 1, O)."""
    H = fused["hidden_dim"]
    O = fused["out_dim"]
    cd = fused["compute_dtype"]
    f32 = jnp.float32

    B, Ts, Ds = small_x.shape
    B2, Tl, Dl = large_x.shape
    assert B == B2
    Tmax = max(Ts, Tl)
    O_pad = fused["fc_w"].shape[-1]

    # Time-major, flattened to (T*B, D) so the hoisted layer-0 projection is one matmul
    # per stack; cast to the MXU operand dtype at the boundary.
    # TODO(synk): for production shapes require time-major inputs upstream (or read
    # (B,T,D) via a BlockSpec index_map) to drop this per-call transpose HBM round-trip.
    sx2 = jnp.transpose(small_x, (1, 0, 2)).reshape(Ts * B, Ds).astype(cd)
    lx2 = jnp.transpose(large_x, (1, 0, 2)).reshape(Tl * B, Dl).astype(cd)

    args = (sx2, lx2,
            fused["w0x_s"], fused["w0x_l"], fused["b0s"], fused["b0l"],
            fused["w0h"], fused["w1"], fused["b1"],
            fused["fc_w"], fused["fc_b"])

    # Everything is VMEM-resident; derive the scoped-VMEM limit from actual buffer sizes
    # (v7x has only 64 MiB physical VMEM, half of v5e/v6e).
    scratch_bytes = Tmax * B * 8 * H * 4
    out_bytes = B * O_pad * 4
    arg_bytes = sum(int(a.size) * a.dtype.itemsize for a in args)
    vmem_limit = int(min(64 * 2 ** 20,
                         max(32 * 2 ** 20, 2 * (arg_bytes + scratch_bytes + out_bytes))))

    vmem = pl.BlockSpec(memory_space=pltpu.MemorySpace.VMEM)
    # TODO(synk): on v7x, split the two stacks across the 2 TensorCores with a size-2 grid
    # axis and dimension_semantics=("parallel",) (drop the cross-stack fusion there); on
    # v5e/v6e keep this single fused chain.
    # TODO(synk): pack/pad the real batch to >= 8 rows upstream -- per-step cost is
    # identical at B=2 and B=8, so that is free extra throughput.
    out = pl.pallas_call(
        functools.partial(_fused_kernel, Ts=Ts, Tl=Tl, B=B, H=H),
        out_shape=jax.ShapeDtypeStruct((B, O_pad), f32),
        in_specs=[vmem] * len(args),
        out_specs=vmem,
        scratch_shapes=[pltpu.VMEM((Tmax, B, 8 * H), f32)],
        compiler_params=pltpu.CompilerParams(vmem_limit_bytes=vmem_limit),
    )(*args)

    return out[:, None, :O]   # unsqueeze(dim=1) -> (B, 1, O)


def _reference_forward_np(small_x, large_x, params, H):
    """Exact float32 NumPy reference matching the PyTorch module semantics."""
    def sigmoid(x):
        return 1.0 / (1.0 + np.exp(-x))

    def lstm2(x, wih0, whh0, b0, wih1, whh1, b1):
        B, T, _ = x.shape

        def cell(x_t, h, c, wih, whh, b):
            gates = x_t @ wih + h @ whh + b
            i = sigmoid(gates[:, 0 * H:1 * H])
            f = sigmoid(gates[:, 1 * H:2 * H])
            g = np.tanh(gates[:, 2 * H:3 * H])
            o = sigmoid(gates[:, 3 * H:4 * H])
            c = f * c + i * g
            h = o * np.tanh(c)
            return h, c

        h0 = c0 = h1 = c1 = np.zeros((B, H), np.float32)
        for t in range(T):
            h0, c0 = cell(x[:, t], h0, c0, wih0, whh0, b0)
            h1, c1 = cell(h0, h1, c1, wih1, whh1, b1)
        return h1

    p = {k: np.asarray(v, np.float32) for k, v in params.items()}
    sx = np.asarray(small_x, np.float32)
    lx = np.asarray(large_x, np.float32)
    sh = lstm2(sx, p["s_wih0"], p["s_whh0"], p["s_b0"], p["s_wih1"], p["s_whh1"], p["s_b1"])
    lh = lstm2(lx, p["l_wih0"], p["l_whh0"], p["l_b0"], p["l_wih1"], p["l_whh1"], p["l_b1"])
    out = np.concatenate([sh, lh], axis=-1) @ p["fc_w"] + p["fc_b"]
    return out[:, None, :]


def init_params(key, small_input_dim, large_input_dim, hidden_dim, output_dim):
    """Deterministic synthetic init mirroring PyTorch LSTM/Linear parameter shapes.

    Weights are stored pre-transposed (in_dim, 4H); biases combine b_ih + b_hh into a
    single (1, 4H) row (mathematically identical to the PyTorch module).
    """
    H = hidden_dim
    k = 1.0 / jnp.sqrt(jnp.float32(H))
    keys = jax.random.split(key, 14)

    def u(kk, shape):
        return jax.random.uniform(kk, shape, jnp.float32, -k, k)

    return {
        "s_wih0": u(keys[0], (small_input_dim, 4 * H)),
        "s_whh0": u(keys[1], (H, 4 * H)),
        "s_b0": u(keys[2], (1, 4 * H)),
        "s_wih1": u(keys[3], (H, 4 * H)),
        "s_whh1": u(keys[4], (H, 4 * H)),
        "s_b1": u(keys[5], (1, 4 * H)),
        "l_wih0": u(keys[6], (large_input_dim, 4 * H)),
        "l_whh0": u(keys[7], (H, 4 * H)),
        "l_b0": u(keys[8], (1, 4 * H)),
        "l_wih1": u(keys[9], (H, 4 * H)),
        "l_whh1": u(keys[10], (H, 4 * H)),
        "l_b1": u(keys[11], (1, 4 * H)),
        "fc_w": u(keys[12], (2 * H, output_dim)),
        "fc_b": u(keys[13], (1, output_dim)),
    }


if __name__ == "__main__":
    B = 2
    Ts, Tl = 8, 8
    small_input_dim = 4
    large_input_dim = 12
    hidden_dim = 32
    output_dim = 6

    key = jax.random.PRNGKey(0)
    k_params, k_sx, k_lx = jax.random.split(key, 3)

    params = init_params(k_params, small_input_dim, large_input_dim, hidden_dim, output_dim)
    small_x = jax.random.normal(k_sx, (B, Ts, small_input_dim), jnp.float32)
    large_x = jax.random.normal(k_lx, (B, Tl, large_input_dim), jnp.float32)

    ref = _reference_forward_np(small_x, large_x, params, hidden_dim)

    # Tighter check: f32 MXU operands (no bf16 rounding of the recurrent state) vs the
    # exact NumPy f32 reference.  Catches structural bugs (swapped gates, wrong packing).
    fused_f32 = prepare_fused_params(params, hidden_dim, compute_dtype=jnp.float32)
    out_f32 = jax.block_until_ready(base_lstm_model_forward(small_x, large_x, fused_f32))
    assert out_f32.shape == (B, 1, output_dim), out_f32.shape
    err_f32 = float(np.max(np.abs(np.asarray(out_f32) - ref)))
    assert err_f32 < 2e-2, f"f32-path max abs error vs reference: {err_f32}"

    # Production path: bf16 MXU operands with f32 accumulation / f32 gate math.
    fused_bf16 = prepare_fused_params(params, hidden_dim, compute_dtype=jnp.bfloat16)
    out = jax.block_until_ready(base_lstm_model_forward(small_x, large_x, fused_bf16))
    assert out.shape == (B, 1, output_dim), out.shape
    err = float(np.max(np.abs(np.asarray(out) - ref)))
    assert err < 1.5e-1, f"bf16-path max abs error vs reference: {err}"

    print("KERNEL_OK")
</pallas_src>

<mosaic_0001>
module attributes {stable_mosaic.version = 11 : i64} {
  func.func @_fused_kernel(%arg0: memref<16x4xf32, #tpu.memory_space<vmem>>, %arg1: memref<16x12xf32, #tpu.memory_space<vmem>>, %arg2: memref<4x256xf32, #tpu.memory_space<vmem>>, %arg3: memref<12x256xf32, #tpu.memory_space<vmem>>, %arg4: memref<1x256xf32, #tpu.memory_space<vmem>>, %arg5: memref<1x256xf32, #tpu.memory_space<vmem>>, %arg6: memref<64x256xf32, #tpu.memory_space<vmem>>, %arg7: memref<128x256xf32, #tpu.memory_space<vmem>>, %arg8: memref<1x256xf32, #tpu.memory_space<vmem>>, %arg9: memref<64x128xf32, #tpu.memory_space<vmem>>, %arg10: memref<1x128xf32, #tpu.memory_space<vmem>>, %arg11: memref<2x128xf32, #tpu.memory_space<vmem>>, %arg12: memref<8x2x256xf32, #tpu.memory_space<vmem>>) attributes {dimension_semantics = [], scalar_prefetch = 0 : i64, scratch_operands = 1 : i64, tpu.core_type = #tpu.core_type<tc>} {
    %c0 = arith.constant 0 : index
    %c0_0 = arith.constant 0 : index
    %0 = vector.load %arg0[%c0, %c0_0] : memref<16x4xf32, #tpu.memory_space<vmem>>, vector<16x4xf32>
    %c0_1 = arith.constant 0 : index
    %c0_2 = arith.constant 0 : index
    %1 = vector.load %arg2[%c0_1, %c0_2] : memref<4x256xf32, #tpu.memory_space<vmem>>, vector<4x256xf32>
    %cst = arith.constant dense<0.000000e+00> : vector<16x256xf32>
    %2 = tpu.matmul %0, %1, %cst {dimension_numbers = #tpu.dot_dimension_numbers<[1], [0], [0], [1], [0, 0, 1, 1], [], []>} : vector<16x4xf32>, vector<4x256xf32>, vector<16x256xf32> -> vector<16x256xf32>
    %c0_3 = arith.constant 0 : index
    %c0_4 = arith.constant 0 : index
    %3 = vector.load %arg4[%c0_3, %c0_4] : memref<1x256xf32, #tpu.memory_space<vmem>>, vector<1x256xf32>
    %4 = vector.broadcast %3 : vector<1x256xf32> to vector<16x256xf32>
    %5 = arith.addf %2, %4 : vector<16x256xf32>
    %c0_5 = arith.constant 0 : index
    %c0_6 = arith.constant 0 : index
    %6 = vector.load %arg1[%c0_5, %c0_6] : memref<16x12xf32, #tpu.memory_space<vmem>>, vector<16x12xf32>
    %c0_7 = arith.constant 0 : index
    %c0_8 = arith.constant 0 : index
    %7 = vector.load %arg3[%c0_7, %c0_8] : memref<12x256xf32, #tpu.memory_space<vmem>>, vector<12x256xf32>
    %cst_9 = arith.constant dense<0.000000e+00> : vector<16x256xf32>
    %8 = tpu.matmul %6, %7, %cst_9 {dimension_numbers = #tpu.dot_dimension_numbers<[1], [0], [0], [1], [0, 0, 1, 1], [], []>} : vector<16x12xf32>, vector<12x256xf32>, vector<16x256xf32> -> vector<16x256xf32>
    %c0_10 = arith.constant 0 : index
    %c0_11 = arith.constant 0 : index
    %9 = vector.load %arg5[%c0_10, %c0_11] : memref<1x256xf32, #tpu.memory_space<vmem>>, vector<1x256xf32>
    %10 = vector.broadcast %9 : vector<1x256xf32> to vector<16x256xf32>
    %11 = arith.addf %8, %10 : vector<16x256xf32>
    %12 = vector.extract_strided_slice %5 {offsets = [0, 0], sizes = [2, 256], strides = [1, 1]} : vector<16x256xf32> to vector<2x256xf32>
    %13 = vector.extract_strided_slice %11 {offsets = [0, 0], sizes = [2, 256], strides = [1, 1]} : vector<16x256xf32> to vector<2x256xf32>
    %14 = arith.addf %12, %13 : vector<2x256xf32>
    %c0_12 = arith.constant 0 : index
    %c0_13 = arith.constant 0 : index
    %c0_14 = arith.constant 0 : index
    %15 = vector.load %arg12[%c0_12, %c0_13, %c0_14] : memref<8x2x256xf32, #tpu.memory_space<vmem>>, vector<1x2x256xf32>
    %16 = vector.shape_cast %15 : vector<1x2x256xf32> to vector<2x256xf32>
    %17 = vector.shape_cast %14 : vector<2x256xf32> to vector<1x2x256xf32>
    tpu.vector_store %arg12[%c0_12, %c0_13, %c0_14], %17 {strides = array<i32>} : memref<8x2x256xf32, #tpu.memory_space<vmem>>, vector<1x2x256xf32>,
    %18 = vector.extract_strided_slice %5 {offsets = [2, 0], sizes = [2, 256], strides = [1, 1]} : vector<16x256xf32> to vector<2x256xf32>
    %19 = vector.extract_strided_slice %11 {offsets = [2, 0], sizes = [2, 256], strides = [1, 1]} : vector<16x256xf32> to vector<2x256xf32>
    %20 = arith.addf %18, %19 : vector<2x256xf32>
    %c1 = arith.constant 1 : index
    %c0_15 = arith.constant 0 : index
    %c0_16 = arith.constant 0 : index
    %21 = vector.load %arg12[%c1, %c0_15, %c0_16] : memref<8x2x256xf32, #tpu.memory_space<vmem>>, vector<1x2x256xf32>
    %22 = vector.shape_cast %21 : vector<1x2x256xf32> to vector<2x256xf32>
    %23 = vector.shape_cast %20 : vector<2x256xf32> to vector<1x2x256xf32>
    tpu.vector_store %arg12[%c1, %c0_15, %c0_16], %23 {strides = array<i32>} : memref<8x2x256xf32, #tpu.memory_space<vmem>>, vector<1x2x256xf32>,
    %24 = vector.extract_strided_slice %5 {offsets = [4, 0], sizes = [2, 256], strides = [1, 1]} : vector<16x256xf32> to vector<2x256xf32>
    %25 = vector.extract_strided_slice %11 {offsets = [4, 0], sizes = [2, 256], strides = [1, 1]} : vector<16x256xf32> to vector<2x256xf32>
    %26 = arith.addf %24, %25 : vector<2x256xf32>
    %c2 = arith.constant 2 : index
    %c0_17 = arith.constant 0 : index
    %c0_18 = arith.constant 0 : index
    %27 = vector.load %arg12[%c2, %c0_17, %c0_18] : memref<8x2x256xf32, #tpu.memory_space<vmem>>, vector<1x2x256xf32>
    %28 = vector.shape_cast %27 : vector<1x2x256xf32> to vector<2x256xf32>
    %29 = vector.shape_cast %26 : vector<2x256xf32> to vector<1x2x256xf32>
    tpu.vector_store %arg12[%c2, %c0_17, %c0_18], %29 {strides = array<i32>} : memref<8x2x256xf32, #tpu.memory_space<vmem>>, vector<1x2x256xf32>,
    %30 = vector.extract_strided_slice %5 {offsets = [6, 0], sizes = [2, 256], strides = [1, 1]} : vector<16x256xf32> to vector<2x256xf32>
    %31 = vector.extract_strided_slice %11 {offsets = [6, 0], sizes = [2, 256], strides = [1, 1]} : vector<16x256xf32> to vector<2x256xf32>
    %32 = arith.addf %30, %31 : vector<2x256xf32>
    %c3 = arith.constant 3 : index
    %c0_19 = arith.constant 0 : index
    %c0_20 = arith.constant 0 : index
    %33 = vector.load %arg12[%c3, %c0_19, %c0_20] : memref<8x2x256xf32, #tpu.memory_space<vmem>>, vector<1x2x256xf32>
    %34 = vector.shape_cast %33 : vector<1x2x256xf32> to vector<2x256xf32>
    %35 = vector.shape_cast %32 : vector<2x256xf32> to vector<1x2x256xf32>
    tpu.vector_store %arg12[%c3, %c0_19, %c0_20], %35 {strides = array<i32>} : memref<8x2x256xf32, #tpu.memory_space<vmem>>, vector<1x2x256xf32>,
    %36 = vector.extract_strided_slice %5 {offsets = [8, 0], sizes = [2, 256], strides = [1, 1]} : vector<16x256xf32> to vector<2x256xf32>
    %37 = vector.extract_strided_slice %11 {offsets = [8, 0], sizes = [2, 256], strides = [1, 1]} : vector<16x256xf32> to vector<2x256xf32>
    %38 = arith.addf %36, %37 : vector<2x256xf32>
    %c4 = arith.constant 4 : index
    %c0_21 = arith.constant 0 : index
    %c0_22 = arith.constant 0 : index
    %39 = vector.load %arg12[%c4, %c0_21, %c0_22] : memref<8x2x256xf32, #tpu.memory_space<vmem>>, vector<1x2x256xf32>
    %40 = vector.shape_cast %39 : vector<1x2x256xf32> to vector<2x256xf32>
    %41 = vector.shape_cast %38 : vector<2x256xf32> to vector<1x2x256xf32>
    tpu.vector_store %arg12[%c4, %c0_21, %c0_22], %41 {strides = array<i32>} : memref<8x2x256xf32, #tpu.memory_space<vmem>>, vector<1x2x256xf32>,
    %42 = vector.extract_strided_slice %5 {offsets = [10, 0], sizes = [2, 256], strides = [1, 1]} : vector<16x256xf32> to vector<2x256xf32>
    %43 = vector.extract_strided_slice %11 {offsets = [10, 0], sizes = [2, 256], strides = [1, 1]} : vector<16x256xf32> to vector<2x256xf32>
    %44 = arith.addf %42, %43 : vector<2x256xf32>
    %c5 = arith.constant 5 : index
    %c0_23 = arith.constant 0 : index
    %c0_24 = arith.constant 0 : index
    %45 = vector.load %arg12[%c5, %c0_23, %c0_24] : memref<8x2x256xf32, #tpu.memory_space<vmem>>, vector<1x2x256xf32>
    %46 = vector.shape_cast %45 : vector<1x2x256xf32> to vector<2x256xf32>
    %47 = vector.shape_cast %44 : vector<2x256xf32> to vector<1x2x256xf32>
    tpu.vector_store %arg12[%c5, %c0_23, %c0_24], %47 {strides = array<i32>} : memref<8x2x256xf32, #tpu.memory_space<vmem>>, vector<1x2x256xf32>,
    %48 = vector.extract_strided_slice %5 {offsets = [12, 0], sizes = [2, 256], strides = [1, 1]} : vector<16x256xf32> to vector<2x256xf32>
    %49 = vector.extract_strided_slice %11 {offsets = [12, 0], sizes = [2, 256], strides = [1, 1]} : vector<16x256xf32> to vector<2x256xf32>
    %50 = arith.addf %48, %49 : vector<2x256xf32>
    %c6 = arith.constant 6 : index
    %c0_25 = arith.constant 0 : index
    %c0_26 = arith.constant 0 : index
    %51 = vector.load %arg12[%c6, %c0_25, %c0_26] : memref<8x2x256xf32, #tpu.memory_space<vmem>>, vector<1x2x256xf32>
    %52 = vector.shape_cast %51 : vector<1x2x256xf32> to vector<2x256xf32>
    %53 = vector.shape_cast %50 : vector<2x256xf32> to vector<1x2x256xf32>
    tpu.vector_store %arg12[%c6, %c0_25, %c0_26], %53 {strides = array<i32>} : memref<8x2x256xf32, #tpu.memory_space<vmem>>, vector<1x2x256xf32>,
    %54 = vector.extract_strided_slice %5 {offsets = [14, 0], sizes = [2, 256], strides = [1, 1]} : vector<16x256xf32> to vector<2x256xf32>
    %55 = vector.extract_strided_slice %11 {offsets = [14, 0], sizes = [2, 256], strides = [1, 1]} : vector<16x256xf32> to vector<2x256xf32>
    %56 = arith.addf %54, %55 : vector<2x256xf32>
    %c7 = arith.constant 7 : index
    %c0_27 = arith.constant 0 : index
    %c0_28 = arith.constant 0 : index
    %57 = vector.load %arg12[%c7, %c0_27, %c0_28] : memref<8x2x256xf32, #tpu.memory_space<vmem>>, vector<1x2x256xf32>
    %58 = vector.shape_cast %57 : vector<1x2x256xf32> to vector<2x256xf32>
    %59 = vector.shape_cast %56 : vector<2x256xf32> to vector<1x2x256xf32>
    tpu.vector_store %arg12[%c7, %c0_27, %c0_28], %59 {strides = array<i32>} : memref<8x2x256xf32, #tpu.memory_space<vmem>>, vector<1x2x256xf32>,
    %c0_29 = arith.constant 0 : index
    %c0_30 = arith.constant 0 : index
    %60 = vector.load %arg6[%c0_29, %c0_30] : memref<64x256xf32, #tpu.memory_space<vmem>>, vector<64x256xf32>
    %c0_31 = arith.constant 0 : index
    %c0_32 = arith.constant 0 : index
    %61 = vector.load %arg7[%c0_31, %c0_32] : memref<128x256xf32, #tpu.memory_space<vmem>>, vector<128x256xf32>
    %c0_33 = arith.constant 0 : index
    %c0_34 = arith.constant 0 : index
    %62 = vector.load %arg8[%c0_33, %c0_34] : memref<1x256xf32, #tpu.memory_space<vmem>>, vector<1x256xf32>
    %63 = vector.shape_cast %62 : vector<1x256xf32> to vector<1x256xf32>
    %64 = vector.broadcast %63 : vector<1x256xf32> to vector<2x256xf32>
    %65 = tpu.iota {dimensions = array<i32: 1>} : vector<2x256xi32>
    %c128_i32 = arith.constant 128 : i32
    %66 = vector.broadcast %c128_i32 : i32 to vector<2x256xi32>
    %67 = arith.cmpi sge, %65, %66 : vector<2x256xi32>
    %c192_i32 = arith.constant 192 : i32
    %68 = vector.broadcast %c192_i32 : i32 to vector<2x256xi32>
    %69 = arith.cmpi slt, %65, %68 : vector<2x256xi32>
    %70 = arith.andi %67, %69 : vector<2x256xi1>
    %cst_35 = arith.constant 0.000000e+00 : f32
    %71 = vector.broadcast %cst_35 : f32 to vector<2x64xf32>
    %c0_i32 = arith.constant 0 : i32
    %72 = arith.index_cast %c0_i32 : i32 to index
    %c0_36 = arith.constant 0 : index
    %c0_37 = arith.constant 0 : index
    %73 = vector.load %arg12[%72, %c0_36, %c0_37] : memref<8x2x256xf32, #tpu.memory_space<vmem>>, vector<1x2x256xf32>
    %74 = vector.shape_cast %73 : vector<1x2x256xf32> to vector<2x256xf32>
    %cst_38 = arith.constant dense<0.000000e+00> : vector<2x256xf32>
    %75 = tpu.matmul %71, %60, %cst_38 {dimension_numbers = #tpu.dot_dimension_numbers<[1], [0], [0], [1], [0, 0, 1, 1], [], []>} : vector<2x64xf32>, vector<64x256xf32>, vector<2x256xf32> -> vector<2x256xf32>
    %76 = arith.addf %74, %75 : vector<2x256xf32>
    %77 = math.tanh %76 : vector<2x256xf32>
    %78 = arith.negf %76 : vector<2x256xf32>
    %79 = math.exp %78 : vector<2x256xf32>
    %cst_39 = arith.constant 1.000000e+00 : f32
    %80 = vector.broadcast %cst_39 : f32 to vector<2x256xf32>
    %81 = arith.addf %80, %79 : vector<2x256xf32>
    %82 = arith.divf %80, %81 : vector<2x256xf32>
    %83 = arith.select %70, %77, %82 : vector<2x256xi1>, vector<2x256xf32>
    %84 = vector.extract_strided_slice %83 {offsets = [0, 0], sizes = [2, 64], strides = [1, 1]} : vector<2x256xf32> to vector<2x64xf32>
    %85 = vector.extract_strided_slice %83 {offsets = [0, 64], sizes = [2, 64], strides = [1, 1]} : vector<2x256xf32> to vector<2x64xf32>
    %86 = vector.extract_strided_slice %83 {offsets = [0, 128], sizes = [2, 64], strides = [1, 1]} : vector<2x256xf32> to vector<2x64xf32>
    %87 = vector.extract_strided_slice %83 {offsets = [0, 192], sizes = [2, 64], strides = [1, 1]} : vector<2x256xf32> to vector<2x64xf32>
    %88 = arith.mulf %85, %71 : vector<2x64xf32>
    %89 = arith.mulf %84, %86 : vector<2x64xf32>
    %90 = arith.addf %88, %89 : vector<2x64xf32>
    %91 = math.tanh %90 : vector<2x64xf32>
    %92 = arith.mulf %87, %91 : vector<2x64xf32>
    %93 = tpu.concatenate %92, %71 in 1 : vector<2x64xf32>, vector<2x64xf32> -> vector<2x128xf32>
    %cst_40 = arith.constant dense<0.000000e+00> : vector<2x256xf32>
    %94 = tpu.matmul %93, %61, %cst_40 {dimension_numbers = #tpu.dot_dimension_numbers<[1], [0], [0], [1], [0, 0, 1, 1], [], []>} : vector<2x128xf32>, vector<128x256xf32>, vector<2x256xf32> -> vector<2x256xf32>
    %95 = arith.addf %94, %64 : vector<2x256xf32>
    %96 = math.tanh %95 : vector<2x256xf32>
    %97 = arith.negf %95 : vector<2x256xf32>
    %98 = math.exp %97 : vector<2x256xf32>
    %cst_41 = arith.constant 1.000000e+00 : f32
    %99 = vector.broadcast %cst_41 : f32 to vector<2x256xf32>
    %100 = arith.addf %99, %98 : vector<2x256xf32>
    %101 = arith.divf %99, %100 : vector<2x256xf32>
    %102 = arith.select %70, %96, %101 : vector<2x256xi1>, vector<2x256xf32>
    %103 = vector.extract_strided_slice %102 {offsets = [0, 0], sizes = [2, 64], strides = [1, 1]} : vector<2x256xf32> to vector<2x64xf32>
    %104 = vector.extract_strided_slice %102 {offsets = [0, 64], sizes = [2, 64], strides = [1, 1]} : vector<2x256xf32> to vector<2x64xf32>
    %105 = vector.extract_strided_slice %102 {offsets = [0, 128], sizes = [2, 64], strides = [1, 1]} : vector<2x256xf32> to vector<2x64xf32>
    %106 = vector.extract_strided_slice %102 {offsets = [0, 192], sizes = [2, 64], strides = [1, 1]} : vector<2x256xf32> to vector<2x64xf32>
    %107 = arith.mulf %104, %71 : vector<2x64xf32>
    %108 = arith.mulf %103, %105 : vector<2x64xf32>
    %109 = arith.addf %107, %108 : vector<2x64xf32>
    %110 = math.tanh %109 : vector<2x64xf32>
    %111 = arith.mulf %106, %110 : vector<2x64xf32>
    %c1_i32 = arith.constant 1 : i32
    %112 = arith.index_cast %c1_i32 : i32 to index
    %c0_42 = arith.constant 0 : index
    %c0_43 = arith.constant 0 : index
    %113 = vector.load %arg12[%112, %c0_42, %c0_43] : memref<8x2x256xf32, #tpu.memory_space<vmem>>, vector<1x2x256xf32>
    %114 = vector.shape_cast %113 : vector<1x2x256xf32> to vector<2x256xf32>
    %cst_44 = arith.constant dense<0.000000e+00> : vector<2x256xf32>
    %115 = tpu.matmul %92, %60, %cst_44 {dimension_numbers = #tpu.dot_dimension_numbers<[1], [0], [0], [1], [0, 0, 1, 1], [], []>} : vector<2x64xf32>, vector<64x256xf32>, vector<2x256xf32> -> vector<2x256xf32>
    %116 = arith.addf %114, %115 : vector<2x256xf32>
    %117 = math.tanh %116 : vector<2x256xf32>
    %118 = arith.negf %116 : vector<2x256xf32>
    %119 = math.exp %118 : vector<2x256xf32>
    %cst_45 = arith.constant 1.000000e+00 : f32
    %120 = vector.broadcast %cst_45 : f32 to vector<2x256xf32>
    %121 = arith.addf %120, %119 : vector<2x256xf32>
    %122 = arith.divf %120, %121 : vector<2x256xf32>
    %123 = arith.select %70, %117, %122 : vector<2x256xi1>, vector<2x256xf32>
    %124 = vector.extract_strided_slice %123 {offsets = [0, 0], sizes = [2, 64], strides = [1, 1]} : vector<2x256xf32> to vector<2x64xf32>
    %125 = vector.extract_strided_slice %123 {offsets = [0, 64], sizes = [2, 64], strides = [1, 1]} : vector<2x256xf32> to vector<2x64xf32>
    %126 = vector.extract_strided_slice %123 {offsets = [0, 128], sizes = [2, 64], strides = [1, 1]} : vector<2x256xf32> to vector<2x64xf32>
    %127 = vector.extract_strided_slice %123 {offsets = [0, 192], sizes = [2, 64], strides = [1, 1]} : vector<2x256xf32> to vector<2x64xf32>
    %128 = arith.mulf %125, %90 : vector<2x64xf32>
    %129 = arith.mulf %124, %126 : vector<2x64xf32>
    %130 = arith.addf %128, %129 : vector<2x64xf32>
    %131 = math.tanh %130 : vector<2x64xf32>
    %132 = arith.mulf %127, %131 : vector<2x64xf32>
    %133 = tpu.concatenate %132, %111 in 1 : vector<2x64xf32>, vector<2x64xf32> -> vector<2x128xf32>
    %cst_46 = arith.constant dense<0.000000e+00> : vector<2x256xf32>
    %134 = tpu.matmul %133, %61, %cst_46 {dimension_numbers = #tpu.dot_dimension_numbers<[1], [0], [0], [1], [0, 0, 1, 1], [], []>} : vector<2x128xf32>, vector<128x256xf32>, vector<2x256xf32> -> vector<2x256xf32>
    %135 = arith.addf %134, %64 : vector<2x256xf32>
    %136 = math.tanh %135 : vector<2x256xf32>
    %137 = arith.negf %135 : vector<2x256xf32>
    %138 = math.exp %137 : vector<2x256xf32>
    %cst_47 = arith.constant 1.000000e+00 : f32
    %139 = vector.broadcast %cst_47 : f32 to vector<2x256xf32>
    %140 = arith.addf %139, %138 : vector<2x256xf32>
    %141 = arith.divf %139, %140 : vector<2x256xf32>
    %142 = arith.select %70, %136, %141 : vector<2x256xi1>, vector<2x256xf32>
    %143 = vector.extract_strided_slice %142 {offsets = [0, 0], sizes = [2, 64], strides = [1, 1]} : vector<2x256xf32> to vector<2x64xf32>
    %144 = vector.extract_strided_slice %142 {offsets = [0, 64], sizes = [2, 64], strides = [1, 1]} : vector<2x256xf32> to vector<2x64xf32>
    %145 = vector.extract_strided_slice %142 {offsets = [0, 128], sizes = [2, 64], strides = [1, 1]} : vector<2x256xf32> to vector<2x64xf32>
    %146 = vector.extract_strided_slice %142 {offsets = [0, 192], sizes = [2, 64], strides = [1, 1]} : vector<2x256xf32> to vector<2x64xf32>
    %147 = arith.mulf %144, %109 : vector<2x64xf32>
    %148 = arith.mulf %143, %145 : vector<2x64xf32>
    %149 = arith.addf %147, %148 : vector<2x64xf32>
    %150 = math.tanh %149 : vector<2x64xf32>
    %151 = arith.mulf %146, %150 : vector<2x64xf32>
    %c2_i32 = arith.constant 2 : i32
    %152 = arith.index_cast %c2_i32 : i32 to index
    %c0_48 = arith.constant 0 : index
    %c0_49 = arith.constant 0 : index
    %153 = vector.load %arg12[%152, %c0_48, %c0_49] : memref<8x2x256xf32, #tpu.memory_space<vmem>>, vector<1x2x256xf32>
    %154 = vector.shape_cast %153 : vector<1x2x256xf32> to vector<2x256xf32>
    %cst_50 = arith.constant dense<0.000000e+00> : vector<2x256xf32>
    %155 = tpu.matmul %132, %60, %cst_50 {dimension_numbers = #tpu.dot_dimension_numbers<[1], [0], [0], [1], [0, 0, 1, 1], [], []>} : vector<2x64xf32>, vector<64x256xf32>, vector<2x256xf32> -> vector<2x256xf32>
    %156 = arith.addf %154, %155 : vector<2x256xf32>
    %157 = math.tanh %156 : vector<2x256xf32>
    %158 = arith.negf %156 : vector<2x256xf32>
    %159 = math.exp %158 : vector<2x256xf32>
    %cst_51 = arith.constant 1.000000e+00 : f32
    %160 = vector.broadcast %cst_51 : f32 to vector<2x256xf32>
    %161 = arith.addf %160, %159 : vector<2x256xf32>
    %162 = arith.divf %160, %161 : vector<2x256xf32>
    %163 = arith.select %70, %157, %162 : vector<2x256xi1>, vector<2x256xf32>
    %164 = vector.extract_strided_slice %163 {offsets = [0, 0], sizes = [2, 64], strides = [1, 1]} : vector<2x256xf32> to vector<2x64xf32>
    %165 = vector.extract_strided_slice %163 {offsets = [0, 64], sizes = [2, 64], strides = [1, 1]} : vector<2x256xf32> to vector<2x64xf32>
    %166 = vector.extract_strided_slice %163 {offsets = [0, 128], sizes = [2, 64], strides = [1, 1]} : vector<2x256xf32> to vector<2x64xf32>
    %167 = vector.extract_strided_slice %163 {offsets = [0, 192], sizes = [2, 64], strides = [1, 1]} : vector<2x256xf32> to vector<2x64xf32>
    %168 = arith.mulf %165, %130 : vector<2x64xf32>
    %169 = arith.mulf %164, %166 : vector<2x64xf32>
    %170 = arith.addf %168, %169 : vector<2x64xf32>
    %171 = math.tanh %170 : vector<2x64xf32>
    %172 = arith.mulf %167, %171 : vector<2x64xf32>
    %173 = tpu.concatenate %172, %151 in 1 : vector<2x64xf32>, vector<2x64xf32> -> vector<2x128xf32>
    %cst_52 = arith.constant dense<0.000000e+00> : vector<2x256xf32>
    %174 = tpu.matmul %173, %61, %cst_52 {dimension_numbers = #tpu.dot_dimension_numbers<[1], [0], [0], [1], [0, 0, 1, 1], [], []>} : vector<2x128xf32>, vector<128x256xf32>, vector<2x256xf32> -> vector<2x256xf32>
    %175 = arith.addf %174, %64 : vector<2x256xf32>
    %176 = math.tanh %175 : vector<2x256xf32>
    %177 = arith.negf %175 : vector<2x256xf32>
    %178 = math.exp %177 : vector<2x256xf32>
    %cst_53 = arith.constant 1.000000e+00 : f32
    %179 = vector.broadcast %cst_53 : f32 to vector<2x256xf32>
    %180 = arith.addf %179, %178 : vector<2x256xf32>
    %181 = arith.divf %179, %180 : vector<2x256xf32>
    %182 = arith.select %70, %176, %181 : vector<2x256xi1>, vector<2x256xf32>
    %183 = vector.extract_strided_slice %182 {offsets = [0, 0], sizes = [2, 64], strides = [1, 1]} : vector<2x256xf32> to vector<2x64xf32>
    %184 = vector.extract_strided_slice %182 {offsets = [0, 64], sizes = [2, 64], strides = [1, 1]} : vector<2x256xf32> to vector<2x64xf32>
    %185 = vector.extract_strided_slice %182 {offsets = [0, 128], sizes = [2, 64], strides = [1, 1]} : vector<2x256xf32> to vector<2x64xf32>
    %186 = vector.extract_strided_slice %182 {offsets = [0, 192], sizes = [2, 64], strides = [1, 1]} : vector<2x256xf32> to vector<2x64xf32>
    %187 = arith.mulf %184, %149 : vector<2x64xf32>
    %188 = arith.mulf %183, %185 : vector<2x64xf32>
    %189 = arith.addf %187, %188 : vector<2x64xf32>
    %190 = math.tanh %189 : vector<2x64xf32>
    %191 = arith.mulf %186, %190 : vector<2x64xf32>
    %c3_i32 = arith.constant 3 : i32
    %192 = arith.index_cast %c3_i32 : i32 to index
    %c0_54 = arith.constant 0 : index
    %c0_55 = arith.constant 0 : index
    %193 = vector.load %arg12[%192, %c0_54, %c0_55] : memref<8x2x256xf32, #tpu.memory_space<vmem>>, vector<1x2x256xf32>
    %194 = vector.shape_cast %193 : vector<1x2x256xf32> to vector<2x256xf32>
    %cst_56 = arith.constant dense<0.000000e+00> : vector<2x256xf32>
    %195 = tpu.matmul %172, %60, %cst_56 {dimension_numbers = #tpu.dot_dimension_numbers<[1], [0], [0], [1], [0, 0, 1, 1], [], []>} : vector<2x64xf32>, vector<64x256xf32>, vector<2x256xf32> -> vector<2x256xf32>
    %196 = arith.addf %194, %195 : vector<2x256xf32>
    %197 = math.tanh %196 : vector<2x256xf32>
    %198 = arith.negf %196 : vector<2x256xf32>
    %199 = math.exp %198 : vector<2x256xf32>
    %cst_57 = arith.constant 1.000000e+00 : f32
    %200 = vector.broadcast %cst_57 : f32 to vector<2x256xf32>
    %201 = arith.addf %200, %199 : vector<2x256xf32>
    %202 = arith.divf %200, %201 : vector<2x256xf32>
    %203 = arith.select %70, %197, %202 : vector<2x256xi1>, vector<2x256xf32>
    %204 = vector.extract_strided_slice %203 {offsets = [0, 0], sizes = [2, 64], strides = [1, 1]} : vector<2x256xf32> to vector<2x64xf32>
    %205 = vector.extract_strided_slice %203 {offsets = [0, 64], sizes = [2, 64], strides = [1, 1]} : vector<2x256xf32> to vector<2x64xf32>
    %206 = vector.extract_strided_slice %203 {offsets = [0, 128], sizes = [2, 64], strides = [1, 1]} : vector<2x256xf32> to vector<2x64xf32>
    %207 = vector.extract_strided_slice %203 {offsets = [0, 192], sizes = [2, 64], strides = [1, 1]} : vector<2x256xf32> to vector<2x64xf32>
    %208 = arith.mulf %205, %170 : vector<2x64xf32>
    %209 = arith.mulf %204, %206 : vector<2x64xf32>
    %210 = arith.addf %208, %209 : vector<2x64xf32>
    %211 = math.tanh %210 : vector<2x64xf32>
    %212 = arith.mulf %207, %211 : vector<2x64xf32>
    %213 = tpu.concatenate %212, %191 in 1 : vector<2x64xf32>, vector<2x64xf32> -> vector<2x128xf32>
    %cst_58 = arith.constant dense<0.000000e+00> : vector<2x256xf32>
    %214 = tpu.matmul %213, %61, %cst_58 {dimension_numbers = #tpu.dot_dimension_numbers<[1], [0], [0], [1], [0, 0, 1, 1], [], []>} : vector<2x128xf32>, vector<128x256xf32>, vector<2x256xf32> -> vector<2x256xf32>
    %215 = arith.addf %214, %64 : vector<2x256xf32>
    %216 = math.tanh %215 : vector<2x256xf32>
    %217 = arith.negf %215 : vector<2x256xf32>
    %218 = math.exp %217 : vector<2x256xf32>
    %cst_59 = arith.constant 1.000000e+00 : f32
    %219 = vector.broadcast %cst_59 : f32 to vector<2x256xf32>
    %220 = arith.addf %219, %218 : vector<2x256xf32>
    %221 = arith.divf %219, %220 : vector<2x256xf32>
    %222 = arith.select %70, %216, %221 : vector<2x256xi1>, vector<2x256xf32>
    %223 = vector.extract_strided_slice %222 {offsets = [0, 0], sizes = [2, 64], strides = [1, 1]} : vector<2x256xf32> to vector<2x64xf32>
    %224 = vector.extract_strided_slice %222 {offsets = [0, 64], sizes = [2, 64], strides = [1, 1]} : vector<2x256xf32> to vector<2x64xf32>
    %225 = vector.extract_strided_slice %222 {offsets = [0, 128], sizes = [2, 64], strides = [1, 1]} : vector<2x256xf32> to vector<2x64xf32>
    %226 = vector.extract_strided_slice %222 {offsets = [0, 192], sizes = [2, 64], strides = [1, 1]} : vector<2x256xf32> to vector<2x64xf32>
    %227 = arith.mulf %224, %189 : vector<2x64xf32>
    %228 = arith.mulf %223, %225 : vector<2x64xf32>
    %229 = arith.addf %227, %228 : vector<2x64xf32>
    %230 = math.tanh %229 : vector<2x64xf32>
    %231 = arith.mulf %226, %230 : vector<2x64xf32>
    %c4_i32 = arith.constant 4 : i32
    %232 = arith.index_cast %c4_i32 : i32 to index
    %c0_60 = arith.constant 0 : index
    %c0_61 = arith.constant 0 : index
    %233 = vector.load %arg12[%232, %c0_60, %c0_61] : memref<8x2x256xf32, #tpu.memory_space<vmem>>, vector<1x2x256xf32>
    %234 = vector.shape_cast %233 : vector<1x2x256xf32> to vector<2x256xf32>
    %cst_62 = arith.constant dense<0.000000e+00> : vector<2x256xf32>
    %235 = tpu.matmul %212, %60, %cst_62 {dimension_numbers = #tpu.dot_dimension_numbers<[1], [0], [0], [1], [0, 0, 1, 1], [], []>} : vector<2x64xf32>, vector<64x256xf32>, vector<2x256xf32> -> vector<2x256xf32>
    %236 = arith.addf %234, %235 : vector<2x256xf32>
    %237 = math.tanh %236 : vector<2x256xf32>
    %238 = arith.negf %236 : vector<2x256xf32>
    %239 = math.exp %238 : vector<2x256xf32>
    %cst_63 = arith.constant 1.000000e+00 : f32
    %240 = vector.broadcast %cst_63 : f32 to vector<2x256xf32>
    %241 = arith.addf %240, %239 : vector<2x256xf32>
    %242 = arith.divf %240, %241 : vector<2x256xf32>
    %243 = arith.select %70, %237, %242 : vector<2x256xi1>, vector<2x256xf32>
    %244 = vector.extract_strided_slice %243 {offsets = [0, 0], sizes = [2, 64], strides = [1, 1]} : vector<2x256xf32> to vector<2x64xf32>
    %245 = vector.extract_strided_slice %243 {offsets = [0, 64], sizes = [2, 64], strides = [1, 1]} : vector<2x256xf32> to vector<2x64xf32>
    %246 = vector.extract_strided_slice %243 {offsets = [0, 128], sizes = [2, 64], strides = [1, 1]} : vector<2x256xf32> to vector<2x64xf32>
    %247 = vector.extract_strided_slice %243 {offsets = [0, 192], sizes = [2, 64], strides = [1, 1]} : vector<2x256xf32> to vector<2x64xf32>
    %248 = arith.mulf %245, %210 : vector<2x64xf32>
    %249 = arith.mulf %244, %246 : vector<2x64xf32>
    %250 = arith.addf %248, %249 : vector<2x64xf32>
    %251 = math.tanh %250 : vector<2x64xf32>
    %252 = arith.mulf %247, %251 : vector<2x64xf32>
    %253 = tpu.concatenate %252, %231 in 1 : vector<2x64xf32>, vector<2x64xf32> -> vector<2x128xf32>
    %cst_64 = arith.constant dense<0.000000e+00> : vector<2x256xf32>
    %254 = tpu.matmul %253, %61, %cst_64 {dimension_numbers = #tpu.dot_dimension_numbers<[1], [0], [0], [1], [0, 0, 1, 1], [], []>} : vector<2x128xf32>, vector<128x256xf32>, vector<2x256xf32> -> vector<2x256xf32>
    %255 = arith.addf %254, %64 : vector<2x256xf32>
    %256 = math.tanh %255 : vector<2x256xf32>
    %257 = arith.negf %255 : vector<2x256xf32>
    %258 = math.exp %257 : vector<2x256xf32>
    %cst_65 = arith.constant 1.000000e+00 : f32
    %259 = vector.broadcast %cst_65 : f32 to vector<2x256xf32>
    %260 = arith.addf %259, %258 : vector<2x256xf32>
    %261 = arith.divf %259, %260 : vector<2x256xf32>
    %262 = arith.select %70, %256, %261 : vector<2x256xi1>, vector<2x256xf32>
    %263 = vector.extract_strided_slice %262 {offsets = [0, 0], sizes = [2, 64], strides = [1, 1]} : vector<2x256xf32> to vector<2x64xf32>
    %264 = vector.extract_strided_slice %262 {offsets = [0, 64], sizes = [2, 64], strides = [1, 1]} : vector<2x256xf32> to vector<2x64xf32>
    %265 = vector.extract_strided_slice %262 {offsets = [0, 128], sizes = [2, 64], strides = [1, 1]} : vector<2x256xf32> to vector<2x64xf32>
    %266 = vector.extract_strided_slice %262 {offsets = [0, 192], sizes = [2, 64], strides = [1, 1]} : vector<2x256xf32> to vector<2x64xf32>
    %267 = arith.mulf %264, %229 : vector<2x64xf32>
    %268 = arith.mulf %263, %265 : vector<2x64xf32>
    %269 = arith.addf %267, %268 : vector<2x64xf32>
    %270 = math.tanh %269 : vector<2x64xf32>
    %271 = arith.mulf %266, %270 : vector<2x64xf32>
    %c5_i32 = arith.constant 5 : i32
    %272 = arith.index_cast %c5_i32 : i32 to index
    %c0_66 = arith.constant 0 : index
    %c0_67 = arith.constant 0 : index
    %273 = vector.load %arg12[%272, %c0_66, %c0_67] : memref<8x2x256xf32, #tpu.memory_space<vmem>>, vector<1x2x256xf32>
    %274 = vector.shape_cast %273 : vector<1x2x256xf32> to vector<2x256xf32>
    %cst_68 = arith.constant dense<0.000000e+00> : vector<2x256xf32>
    %275 = tpu.matmul %252, %60, %cst_68 {dimension_numbers = #tpu.dot_dimension_numbers<[1], [0], [0], [1], [0, 0, 1, 1], [], []>} : vector<2x64xf32>, vector<64x256xf32>, vector<2x256xf32> -> vector<2x256xf32>
    %276 = arith.addf %274, %275 : vector<2x256xf32>
    %277 = math.tanh %276 : vector<2x256xf32>
    %278 = arith.negf %276 : vector<2x256xf32>
    %279 = math.exp %278 : vector<2x256xf32>
    %cst_69 = arith.constant 1.000000e+00 : f32
    %280 = vector.broadcast %cst_69 : f32 to vector<2x256xf32>
    %281 = arith.addf %280, %279 : vector<2x256xf32>
    %282 = arith.divf %280, %281 : vector<2x256xf32>
    %283 = arith.select %70, %277, %282 : vector<2x256xi1>, vector<2x256xf32>
    %284 = vector.extract_strided_slice %283 {offsets = [0, 0], sizes = [2, 64], strides = [1, 1]} : vector<2x256xf32> to vector<2x64xf32>
    %285 = vector.extract_strided_slice %283 {offsets = [0, 64], sizes = [2, 64], strides = [1, 1]} : vector<2x256xf32> to vector<2x64xf32>
    %286 = vector.extract_strided_slice %283 {offsets = [0, 128], sizes = [2, 64], strides = [1, 1]} : vector<2x256xf32> to vector<2x64xf32>
    %287 = vector.extract_strided_slice %283 {offsets = [0, 192], sizes = [2, 64], strides = [1, 1]} : vector<2x256xf32> to vector<2x64xf32>
    %288 = arith.mulf %285, %250 : vector<2x64xf32>
    %289 = arith.mulf %284, %286 : vector<2x64xf32>
    %290 = arith.addf %288, %289 : vector<2x64xf32>
    %291 = math.tanh %290 : vector<2x64xf32>
    %292 = arith.mulf %287, %291 : vector<2x64xf32>
    %293 = tpu.concatenate %292, %271 in 1 : vector<2x64xf32>, vector<2x64xf32> -> vector<2x128xf32>
    %cst_70 = arith.constant dense<0.000000e+00> : vector<2x256xf32>
    %294 = tpu.matmul %293, %61, %cst_70 {dimension_numbers = #tpu.dot_dimension_numbers<[1], [0], [0], [1], [0, 0, 1, 1], [], []>} : vector<2x128xf32>, vector<128x256xf32>, vector<2x256xf32> -> vector<2x256xf32>
    %295 = arith.addf %294, %64 : vector<2x256xf32>
    %296 = math.tanh %295 : vector<2x256xf32>
    %297 = arith.negf %295 : vector<2x256xf32>
    %298 = math.exp %297 : vector<2x256xf32>
    %cst_71 = arith.constant 1.000000e+00 : f32
    %299 = vector.broadcast %cst_71 : f32 to vector<2x256xf32>
    %300 = arith.addf %299, %298 : vector<2x256xf32>
    %301 = arith.divf %299, %300 : vector<2x256xf32>
    %302 = arith.select %70, %296, %301 : vector<2x256xi1>, vector<2x256xf32>
    %303 = vector.extract_strided_slice %302 {offsets = [0, 0], sizes = [2, 64], strides = [1, 1]} : vector<2x256xf32> to vector<2x64xf32>
    %304 = vector.extract_strided_slice %302 {offsets = [0, 64], sizes = [2, 64], strides = [1, 1]} : vector<2x256xf32> to vector<2x64xf32>
    %305 = vector.extract_strided_slice %302 {offsets = [0, 128], sizes = [2, 64], strides = [1, 1]} : vector<2x256xf32> to vector<2x64xf32>
    %306 = vector.extract_strided_slice %302 {offsets = [0, 192], sizes = [2, 64], strides = [1, 1]} : vector<2x256xf32> to vector<2x64xf32>
    %307 = arith.mulf %304, %269 : vector<2x64xf32>
    %308 = arith.mulf %303, %305 : vector<2x64xf32>
    %309 = arith.addf %307, %308 : vector<2x64xf32>
    %310 = math.tanh %309 : vector<2x64xf32>
    %311 = arith.mulf %306, %310 : vector<2x64xf32>
    %c6_i32 = arith.constant 6 : i32
    %312 = arith.index_cast %c6_i32 : i32 to index
    %c0_72 = arith.constant 0 : index
    %c0_73 = arith.constant 0 : index
    %313 = vector.load %arg12[%312, %c0_72, %c0_73] : memref<8x2x256xf32, #tpu.memory_space<vmem>>, vector<1x2x256xf32>
    %314 = vector.shape_cast %313 : vector<1x2x256xf32> to vector<2x256xf32>
    %cst_74 = arith.constant dense<0.000000e+00> : vector<2x256xf32>
    %315 = tpu.matmul %292, %60, %cst_74 {dimension_numbers = #tpu.dot_dimension_numbers<[1], [0], [0], [1], [0, 0, 1, 1], [], []>} : vector<2x64xf32>, vector<64x256xf32>, vector<2x256xf32> -> vector<2x256xf32>
    %316 = arith.addf %314, %315 : vector<2x256xf32>
    %317 = math.tanh %316 : vector<2x256xf32>
    %318 = arith.negf %316 : vector<2x256xf32>
    %319 = math.exp %318 : vector<2x256xf32>
    %cst_75 = arith.constant 1.000000e+00 : f32
    %320 = vector.broadcast %cst_75 : f32 to vector<2x256xf32>
    %321 = arith.addf %320, %319 : vector<2x256xf32>
    %322 = arith.divf %320, %321 : vector<2x256xf32>
    %323 = arith.select %70, %317, %322 : vector<2x256xi1>, vector<2x256xf32>
    %324 = vector.extract_strided_slice %323 {offsets = [0, 0], sizes = [2, 64], strides = [1, 1]} : vector<2x256xf32> to vector<2x64xf32>
    %325 = vector.extract_strided_slice %323 {offsets = [0, 64], sizes = [2, 64], strides = [1, 1]} : vector<2x256xf32> to vector<2x64xf32>
    %326 = vector.extract_strided_slice %323 {offsets = [0, 128], sizes = [2, 64], strides = [1, 1]} : vector<2x256xf32> to vector<2x64xf32>
    %327 = vector.extract_strided_slice %323 {offsets = [0, 192], sizes = [2, 64], strides = [1, 1]} : vector<2x256xf32> to vector<2x64xf32>
    %328 = arith.mulf %325, %290 : vector<2x64xf32>
    %329 = arith.mulf %324, %326 : vector<2x64xf32>
    %330 = arith.addf %328, %329 : vector<2x64xf32>
    %331 = math.tanh %330 : vector<2x64xf32>
    %332 = arith.mulf %327, %331 : vector<2x64xf32>
    %333 = tpu.concatenate %332, %311 in 1 : vector<2x64xf32>, vector<2x64xf32> -> vector<2x128xf32>
    %cst_76 = arith.constant dense<0.000000e+00> : vector<2x256xf32>
    %334 = tpu.matmul %333, %61, %cst_76 {dimension_numbers = #tpu.dot_dimension_numbers<[1], [0], [0], [1], [0, 0, 1, 1], [], []>} : vector<2x128xf32>, vector<128x256xf32>, vector<2x256xf32> -> vector<2x256xf32>
    %335 = arith.addf %334, %64 : vector<2x256xf32>
    %336 = math.tanh %335 : vector<2x256xf32>
    %337 = arith.negf %335 : vector<2x256xf32>
    %338 = math.exp %337 : vector<2x256xf32>
    %cst_77 = arith.constant 1.000000e+00 : f32
    %339 = vector.broadcast %cst_77 : f32 to vector<2x256xf32>
    %340 = arith.addf %339, %338 : vector<2x256xf32>
    %341 = arith.divf %339, %340 : vector<2x256xf32>
    %342 = arith.select %70, %336, %341 : vector<2x256xi1>, vector<2x256xf32>
    %343 = vector.extract_strided_slice %342 {offsets = [0, 0], sizes = [2, 64], strides = [1, 1]} : vector<2x256xf32> to vector<2x64xf32>
    %344 = vector.extract_strided_slice %342 {offsets = [0, 64], sizes = [2, 64], strides = [1, 1]} : vector<2x256xf32> to vector<2x64xf32>
    %345 = vector.extract_strided_slice %342 {offsets = [0, 128], sizes = [2, 64], strides = [1, 1]} : vector<2x256xf32> to vector<2x64xf32>
    %346 = vector.extract_strided_slice %342 {offsets = [0, 192], sizes = [2, 64], strides = [1, 1]} : vector<2x256xf32> to vector<2x64xf32>
    %347 = arith.mulf %344, %309 : vector<2x64xf32>
    %348 = arith.mulf %343, %345 : vector<2x64xf32>
    %349 = arith.addf %347, %348 : vector<2x64xf32>
    %350 = math.tanh %349 : vector<2x64xf32>
    %351 = arith.mulf %346, %350 : vector<2x64xf32>
    %c7_i32 = arith.constant 7 : i32
    %352 = arith.index_cast %c7_i32 : i32 to index
    %c0_78 = arith.constant 0 : index
    %c0_79 = arith.constant 0 : index
    %353 = vector.load %arg12[%352, %c0_78, %c0_79] : memref<8x2x256xf32, #tpu.memory_space<vmem>>, vector<1x2x256xf32>
    %354 = vector.shape_cast %353 : vector<1x2x256xf32> to vector<2x256xf32>
    %cst_80 = arith.constant dense<0.000000e+00> : vector<2x256xf32>
    %355 = tpu.matmul %332, %60, %cst_80 {dimension_numbers = #tpu.dot_dimension_numbers<[1], [0], [0], [1], [0, 0, 1, 1], [], []>} : vector<2x64xf32>, vector<64x256xf32>, vector<2x256xf32> -> vector<2x256xf32>
    %356 = arith.addf %354, %355 : vector<2x256xf32>
    %357 = math.tanh %356 : vector<2x256xf32>
    %358 = arith.negf %356 : vector<2x256xf32>
    %359 = math.exp %358 : vector<2x256xf32>
    %cst_81 = arith.constant 1.000000e+00 : f32
    %360 = vector.broadcast %cst_81 : f32 to vector<2x256xf32>
    %361 = arith.addf %360, %359 : vector<2x256xf32>
    %362 = arith.divf %360, %361 : vector<2x256xf32>
    %363 = arith.select %70, %357, %362 : vector<2x256xi1>, vector<2x256xf32>
    %364 = vector.extract_strided_slice %363 {offsets = [0, 0], sizes = [2, 64], strides = [1, 1]} : vector<2x256xf32> to vector<2x64xf32>
    %365 = vector.extract_strided_slice %363 {offsets = [0, 64], sizes = [2, 64], strides = [1, 1]} : vector<2x256xf32> to vector<2x64xf32>
    %366 = vector.extract_strided_slice %363 {offsets = [0, 128], sizes = [2, 64], strides = [1, 1]} : vector<2x256xf32> to vector<2x64xf32>
    %367 = vector.extract_strided_slice %363 {offsets = [0, 192], sizes = [2, 64], strides = [1, 1]} : vector<2x256xf32> to vector<2x64xf32>
    %368 = arith.mulf %365, %330 : vector<2x64xf32>
    %369 = arith.mulf %364, %366 : vector<2x64xf32>
    %370 = arith.addf %368, %369 : vector<2x64xf32>
    %371 = math.tanh %370 : vector<2x64xf32>
    %372 = arith.mulf %367, %371 : vector<2x64xf32>
    %373 = tpu.concatenate %372, %351 in 1 : vector<2x64xf32>, vector<2x64xf32> -> vector<2x128xf32>
    %cst_82 = arith.constant dense<0.000000e+00> : vector<2x256xf32>
    %374 = tpu.matmul %373, %61, %cst_82 {dimension_numbers = #tpu.dot_dimension_numbers<[1], [0], [0], [1], [0, 0, 1, 1], [], []>} : vector<2x128xf32>, vector<128x256xf32>, vector<2x256xf32> -> vector<2x256xf32>
    %375 = arith.addf %374, %64 : vector<2x256xf32>
    %376 = math.tanh %375 : vector<2x256xf32>
    %377 = arith.negf %375 : vector<2x256xf32>
    %378 = math.exp %377 : vector<2x256xf32>
    %cst_83 = arith.constant 1.000000e+00 : f32
    %379 = vector.broadcast %cst_83 : f32 to vector<2x256xf32>
    %380 = arith.addf %379, %378 : vector<2x256xf32>
    %381 = arith.divf %379, %380 : vector<2x256xf32>
    %382 = arith.select %70, %376, %381 : vector<2x256xi1>, vector<2x256xf32>
    %383 = vector.extract_strided_slice %382 {offsets = [0, 0], sizes = [2, 64], strides = [1, 1]} : vector<2x256xf32> to vector<2x64xf32>
    %384 = vector.extract_strided_slice %382 {offsets = [0, 64], sizes = [2, 64], strides = [1, 1]} : vector<2x256xf32> to vector<2x64xf32>
    %385 = vector.extract_strided_slice %382 {offsets = [0, 128], sizes = [2, 64], strides = [1, 1]} : vector<2x256xf32> to vector<2x64xf32>
    %386 = vector.extract_strided_slice %382 {offsets = [0, 192], sizes = [2, 64], strides = [1, 1]} : vector<2x256xf32> to vector<2x64xf32>
    %387 = arith.mulf %384, %349 : vector<2x64xf32>
    %388 = arith.mulf %383, %385 : vector<2x64xf32>
    %389 = arith.addf %387, %388 : vector<2x64xf32>
    %390 = math.tanh %389 : vector<2x64xf32>
    %391 = arith.mulf %386, %390 : vector<2x64xf32>
    %c8_i32 = arith.constant 8 : i32
    %c0_84 = arith.constant 0 : index
    %c0_85 = arith.constant 0 : index
    %392 = vector.load %arg9[%c0_84, %c0_85] : memref<64x128xf32, #tpu.memory_space<vmem>>, vector<64x128xf32>
    %cst_86 = arith.constant dense<0.000000e+00> : vector<2x128xf32>
    %393 = tpu.matmul %391, %392, %cst_86 {dimension_numbers = #tpu.dot_dimension_numbers<[1], [0], [0], [1], [0, 0, 1, 1], [], []>} : vector<2x64xf32>, vector<64x128xf32>, vector<2x128xf32> -> vector<2x128xf32>
    %c0_87 = arith.constant 0 : index
    %c0_88 = arith.constant 0 : index
    %394 = vector.load %arg10[%c0_87, %c0_88] : memref<1x128xf32, #tpu.memory_space<vmem>>, vector<1x128xf32>
    %395 = vector.broadcast %394 : vector<1x128xf32> to vector<2x128xf32>
    %396 = arith.addf %393, %395 : vector<2x128xf32>
    %c0_89 = arith.constant 0 : index
    %c0_90 = arith.constant 0 : index
    %397 = vector.load %arg11[%c0_89, %c0_90] : memref<2x128xf32, #tpu.memory_space<vmem>>, vector<2x128xf32>
    tpu.vector_store %arg11[%c0_89, %c0_90], %396 {strides = array<i32>} : memref<2x128xf32, #tpu.memory_space<vmem>>, vector<2x128xf32>,
    return
  }
}

</mosaic_0001>

<bundles_post_ra>
// kernel: tpu_custom_call.1
= control target key start
LH: loop header
LB: loop body
LE: loop exit
PB: predicated region body
PF: predicated region fallthrough
CT: control target
= control target key end

     0   :  { %16 = vsyncpa [#allocation4], 0  ;;  %s3810_s0 = inlined_call_operand.vmem [shape: f32[16,4], index: 0, kind: input, shape index: {}]   ;;  %s3811_s1 = inlined_call_operand.vmem [shape: f32[16,12], index: 1, kind: input, shape index: {}]   ;;  %s3812_s2 = inlined_call_operand.vmem [shape: f32[4,256], index: 2, kind: input, shape index: {}]   ;;  %s3813_s3 = inlined_call_operand.hbm [shape: f32[12,256], index: 3, kind: input, shape index: {}]   ;;  %s3814_s4 = inlined_call_operand.vmem [shape: f32[1,256], index: 4, kind: input, shape index: {}]   ;;  %s3815_s5 = inlined_call_operand.vmem [shape: f32[1,256], index: 5, kind: input, shape index: {}]   ;;  %s3816_s6 = inlined_call_operand.hbm [shape: f32[64,256], index: 6, kind: input, shape index: {}]   ;;  %s3817_s7 = inlined_call_operand.hbm [shape: f32[128,256], index: 7, kind: input, shape index: {}]   ;;  %s3818_s8 = inlined_call_operand.vmem [shape: f32[1,256], index: 8, kind: input, shape index: {}]   ;;  %s3819_s9 = inlined_call_operand.hbm [shape: f32[64,128], index: 9, kind: input, shape index: {}]   ;;  %s3820_s10 = inlined_call_operand.vmem [shape: f32[1,128], index: 10, kind: input, shape index: {}]   ;;  %s3821_s11 = inlined_call_operand.hbm [shape: f32[2,128], index: 11, kind: output, shape index: {}]  }
   0x1   :  { %17 = vsyncpa [#allocation7], 0 }
   0x2   :  { %18 = vsyncpa [#allocation10], 0 }
   0x3   :  { %19 = vsyncpa [#allocation5], 0  ;;  %s3152_s17 = smov [#allocation6]   ;;  %s3153_s19 = smov [#allocation3]  }
   0x4   :  { %s47_s18 = sshll.u32 %s3152_s17, 4  ;;  %s31_s20 = sshll.u32 %s3153_s19, 4  ;;  %s48_s18 = int_to_ptr.vmem [resolvable:$true] %s47_s18  ;;  %s3227_s20 = int_to_ptr.vmem [resolvable:$true] %s31_s20 }
   0x5   :  { %s3034_s23 = scalar_lea.hbm %s3816_s6, 2048 }
   0x6   :  { %p3035_p0 = scmp.ne.s32.totalorder %s3816_s6, %s3034_s23  ;;  %p3038_p1 = scmp.lt.u32.totalorder %s3034_s23, %s3816_s6 }
   0x8   :  { %p3040_p2 = pnand %p3038_p1, %p3035_p0 }
   0xa   :  { %3043 = shalt.err (!%p3040_p2)
}
   0xb   :  { %s3044_s28 = scalar_lea.vmem %s48_s18, 2048  ;;  %p3049_p4 = scmp.lt.s32.totalorder %s48_s18, %s48_s18 }
   0xc   :  { %p3045_p3 = scmp.ne.s32.totalorder %s48_s18, %s3044_s28  ;;  %p3050_p5 = scmp.lt.s32.totalorder %s3044_s28, %s3044_s28 }
   0xe   :  { %p3051_p6 = por %p3050_p5, %p3049_p4 }
  0x10   :  { %p3052_p7 = pnand %p3051_p6, %p3045_p3 }
  0x12   :  { %3055 = shalt.err (!%p3052_p7)
}
  0x13   :  { %s3154_s29 = smov 256   ;;  %s3155_s30 = smov 16  }
  0x14   :  { %53 = dma.hbm_to_vmem [thread:$0]  %s3816_s6, 2048, %s48_s18, [#allocation7], %s3154_s29, %s3154_s29, %s3155_s30  }
  0x15   :  { %s3056_s16 = scalar_lea.hbm %s3813_s3, 512 }
  0x16   :  { %p3057_p8 = scmp.ne.s32.totalorder %s3813_s3, %s3056_s16  ;;  %p3060_p9 = scmp.lt.u32.totalorder %s3056_s16, %s3813_s3 }
  0x18   :  { %p3062_p10 = pnand %p3060_p9, %p3057_p8 }
  0x1a   :  { %3065 = shalt.err (!%p3062_p10)
}
  0x1b   :  { %s3066_s23 = scalar_lea.vmem %s3227_s20, 512  ;;  %p3071_p12 = scmp.lt.s32.totalorder %s3227_s20, %s3227_s20 }
  0x1c   :  { %p3067_p11 = scmp.ne.s32.totalorder %s3227_s20, %s3066_s23  ;;  %p3072_p13 = scmp.lt.s32.totalorder %s3066_s23, %s3066_s23 }
  0x1e   :  { %p3073_p0 = por %p3072_p13, %p3071_p12 }
  0x20   :  { %p3074_p1 = pnand %p3073_p0, %p3067_p11 }
  0x22   :  { %3077 = shalt.err (!%p3074_p1)
}
  0x23   :  { %37 = dma.hbm_to_vmem [thread:$0]  %s3813_s3, 512, %s3227_s20, [#allocation4], %s3154_s29, %s3154_s29, %s3155_s30  }
  0x24   :  { %s3156_s24 = smov [#allocation8]   ;;  %s3157_s26 = smov [#allocation9]  }
  0x25   :  { %s59_s25 = sshll.u32 %s3156_s24, 4  ;;  %s73_s27 = sshll.u32 %s3157_s26, 4  ;;  %s60_s25 = int_to_ptr.vmem [resolvable:$true] %s59_s25  ;;  %s3264_s27 = int_to_ptr.vmem [resolvable:$true] %s73_s27 }
  0x26   :  { %s3078_s13 = scalar_lea.hbm %s3817_s7, 4096 }
  0x27   :  { %p3079_p2 = scmp.ne.s32.totalorder %s3817_s7, %s3078_s13  ;;  %p3082_p3 = scmp.lt.u32.totalorder %s3078_s13, %s3817_s7 }
  0x29   :  { %p3084_p4 = pnand %p3082_p3, %p3079_p2 }
  0x2b   :  { %3087 = shalt.err (!%p3084_p4)
}
  0x2c   :  { %s3088_s3 = scalar_lea.vmem %s60_s25, 4096  ;;  %p3093_p6 = scmp.lt.s32.totalorder %s60_s25, %s60_s25 }
  0x2d   :  { %p3089_p5 = scmp.ne.s32.totalorder %s60_s25, %s3088_s3  ;;  %p3094_p7 = scmp.lt.s32.totalorder %s3088_s3, %s3088_s3 }
  0x2f   :  { %p3095_p8 = por %p3094_p7, %p3093_p6 }
  0x31   :  { %p3096_p9 = pnand %p3095_p8, %p3089_p5 }
  0x33   :  { %3099 = shalt.err (!%p3096_p9)
}
  0x34   :  { %65 = dma.hbm_to_vmem [thread:$0]  %s3817_s7, 4096, %s60_s25, [#allocation7], %s3154_s29, %s3154_s29, %s3155_s30  }
  0x35   :  { %s3100_s23 = scalar_lea.hbm %s3819_s9, 1024 }
  0x36   :  { %p3101_p10 = scmp.ne.s32.totalorder %s3819_s9, %s3100_s23  ;;  %p3104_p11 = scmp.lt.u32.totalorder %s3100_s23, %s3819_s9 }
  0x38   :  { %p3106_p12 = pnand %p3104_p11, %p3101_p10 }
  0x3a   :  { %3109 = shalt.err (!%p3106_p12)
}
  0x3b   :  { %s3110_s28 = scalar_lea.vmem %s3264_s27, 1024  ;;  %p3115_p0 = scmp.lt.s32.totalorder %s3264_s27, %s3264_s27 }
  0x3c   :  { %p3111_p13 = scmp.ne.s32.totalorder %s3264_s27, %s3110_s28  ;;  %p3116_p1 = scmp.lt.s32.totalorder %s3110_s28, %s3110_s28 }
  0x3e   :  { %p3117_p2 = por %p3116_p1, %p3115_p0 }
  0x40   :  { %p3118_p3 = pnand %p3117_p2, %p3111_p13 }
  0x42   :  { %3121 = shalt.err (!%p3118_p3)
}
  0x43   :  { %s3158_s7 = smov 128   ;;  %s3159_s29 = smov 8  }
  0x44   :  { %79 = dma.hbm_to_vmem [thread:$0]  %s3819_s9, 1024, %s3264_s27, [#allocation10], %s3158_s7, %s3158_s7, %s3159_s29  }
  0x45   :  { %3144 = dma.done.wait [#allocation4], 512  }
  0x46   :  { %3145 = vsyncadd [#allocation4], 4294966784 }
  0x47   :  { %3146 = dma.done.wait [#allocation7], 6144  }
  0x48   :  { %3147 = vsyncadd [#allocation7], 4294961152 }
  0x49   :  { %3148 = dma.done.wait [#allocation10], 1024  }
  0x4a   :  { %3149 = vsyncadd [#allocation10], 4294966272  ;;  %v3160_v0 = vmov 0.0   ;;  %vm118_vm0 = vcmask 1043456   ;;  %vm3161_vm1 = vmmov 1   ;;  %v96_v2 = vld [vmem:[%s3812_s2] sm:$0xff]  ;;  %v99_v38 = vlaneseq }
  0x4b   :  { %187 = vmatprep.mubr.f32.mxu0 %v3160_v0  ;;  %513 = vmatprep.mubr.f32.mxu1 %v3160_v0  ;;  %vm3301_vm2 = vmpackc.low %vm118_vm0, %vm3161_vm1  ;;  %v94_v3 = vld [vmem:[%s3810_s0] sm:$0xff]  ;;  %v203_v4 = vld [vmem:[#allocation3 + $0x8] sm:$0xff]  ;;  %v110_v5 = vcombine.high %v96_v2, %v96_v2  ;;  %vm111_vm3 = vcmask 31744   ;;  %vm218_vm4 = vcmask 97280   ;;  %v3162_v46 = vmov 1983009808  }
  0x4c   :  { %v205_v6 = vld [vmem:[#allocation3 + $0x18] sm:$0xf]  ;;  %v376_v7 = vld [vmem:[#allocation6 + $0x8] sm:$0xff]  ;;  %v202_v11 = vld [vmem:[#allocation3] sm:$0xff]  ;;  %v100_v39 = vshrl.u32 %v99_v38, 7  ;;  %v314_v47 = vunpack.c.l.s4 %v3162_v46  ;;  %vm445_vm6 = vcmask 523264  }
  0x4d   :  { %v378_v8 = vld [vmem:[#allocation6 + $0x18] sm:$0xff]  ;;  %v2444_v9 = vpack.c.bf16 %v205_v6, %v203_v4  ;;  %v204_v12 = vld [vmem:[#allocation3 + $0x10] sm:$0xf]  ;;  %v375_v13 = vld [vmem:[#allocation6] sm:$0xff]  ;;  %2370 = vmatprep.subr.msk.mxu0 %vm118_vm0, %v110_v5  ;;  %vm3165_vm7 = vmmov 0   ;;  %s3166_s23 = smov [#allocation11]  }
  0x4e   :  { %v3311_v10 = vpack.c.bf16 %v378_v8, %v376_v7  ;;  %v2447_v14 = vpack.c.bf16 %v204_v12, %v202_v11  ;;  %v377_v15 = vld [vmem:[#allocation6 + $0x10] sm:$0xff]  ;;  %v380_v16 = vld [vmem:[#allocation6 + $0x28] sm:$0xff]  ;;  %2371 = vmatpush1.msk.msra.mxu0 %vm118_vm0, %v96_v2  ;;  %v382_v18 = vld [vmem:[#allocation6 + $0x38] sm:$0xff]  ;;  %v3366_v40 = vsub.s32 0, %v100_v39  ;;  %v3374_v43 = vsub.s32 1, %v100_v39  ;;  %s2359_s6 = sshll.u32 %s3166_s23, 4  ;;  %s2360_s6 = int_to_ptr.vmem [resolvable:$true] %s2359_s6 }
  0x4f   :  { %v3316_v17 = vpack.c.bf16 %v377_v15, %v375_v13  ;;  %v379_v19 = vld [vmem:[#allocation6 + $0x20] sm:$0xff]  ;;  %v381_v20 = vld [vmem:[#allocation6 + $0x30] sm:$0xff]  ;;  %2372 = vmatmul.mubr.msk.f32.vlgmr.msra.gmra.mrb[0].mxu0 %vm111_vm3, %v94_v3  ;;  %2446 = vmatprep.subr.msk.bf16.mxu0 %vm3301_vm2, %v2444_v9  ;;  %v3321_v21 = vpack.c.bf16 %v382_v18, %v380_v16  ;;  %v384_v22 = vld [vmem:[#allocation6 + $0x48] sm:$0xff]  ;;  %v315_v51 = vunpack.c.0.s8 %v314_v47  ;;  %s3122_s18 = scalar_lea.vmem %s2360_s6, 32  ;;  %p3127_p5 = scmp.lt.s32.totalorder %s2360_s6, %s2360_s6 }
  0x50   :  { %2451 = vmatprep.subr.bf16.mxu1 %v3311_v10  ;;  %v386_v23 = vld [vmem:[#allocation6 + $0x58] sm:$0xff]  ;;  %2449 = vmatpush1.bf16.msk.msra.mxu0 %vm3301_vm2, %v2447_v14  ;;  %v95_v24 = vld [vmem:[%s3810_s0 + $0x8] sm:$0xff]  ;;  %v3329_v25 = vpack.c.bf16 %v381_v20, %v379_v19  ;;  %v385_v28 = vld [vmem:[#allocation6 + $0x50] sm:$0xff]  ;;  %p3123_p4 = scmp.ne.s32.totalorder %s2360_s6, %s3122_s18  ;;  %p3128_p6 = scmp.lt.s32.totalorder %s3122_s18, %s3122_s18 }
  0x51   :  { %2453 = vmatpush1.bf16.msra.mxu1 %v3316_v17  ;;  %193 = vmatprep.mubr.f32.mxu0 %v3160_v0  ;;  %v3333_v26 = vpack.c.bf16 %v386_v23, %v384_v22  ;;  %v383_v27 = vld [vmem:[#allocation6 + $0x40] sm:$0xff]  ;;  %v388_v29 = vld [vmem:[#allocation6 + $0x68] sm:$0xff]  ;;  %v390_v30 = vld [vmem:[#allocation6 + $0x78] sm:$0xff]  ;;  %v3380_v56 = vsub.s32 %v315_v51, %v100_v39  ;;  %v436_v23 = vand.u32 127, %v99_v38 }
  0x52   :  { %2455 = vmatprep.subr.bf16.mxu1 %v3321_v21  ;;  %v200_v31 = vld [vmem:[%s3811_s1] sm:$0xff]  ;;  %v3341_v32 = vpack.c.bf16 %v385_v28, %v383_v27  ;;  %v3344_v33 = vpack.c.bf16 %v390_v30, %v388_v29  ;;  %v387_v34 = vld [vmem:[#allocation6 + $0x60] sm:$0xff]  ;;  %v389_v35 = vld [vmem:[#allocation6 + $0x70] sm:$0xff]  ;;  %p3129_p7 = por %p3128_p6, %p3127_p5 }
  0x53   :  { %2373 = vmatmul.mubr.msk.f32.gmra.mrb[2].mxu0 %vm111_vm3, %v95_v24  ;;  %v201_v36 = vld [vmem:[%s3811_s1 + $0x8] sm:$0xff]  ;;  %v3351_v37 = vpack.c.bf16 %v389_v35, %v387_v34  ;;  %v97_v41 = vld [vmem:[%s3814_s4] sm:$0x3]  ;;  %v3387_v27 = vadd.s32 128, %v436_v23  ;;  %s3163_s4 = smov 64   ;;  %v392_v38 = vld [vmem:[#allocation8 + $0x8] sm:$0xff] }
  0x54   :  { %295 = vmatprep.mubr.f32.mxu0 %v3160_v0  ;;  %v206_v42 = vld [vmem:[%s3815_s5] sm:$0x3]  ;;  %v102_v44 = vrot.slane %v97_v41, %v3366_v40  ;;  %v106_v48 = vrot.slane %v97_v41, %v3374_v43  ;;  %v391_v41 = vld [vmem:[#allocation8] sm:$0xff]  ;;  %v400_v51 = vld [vmem:[#allocation8 + $0x48] sm:$0xff]  ;;  %p3130_p8 = pnand %p3129_p7, %p3123_p4 }
  0x55   :  { %2457 = vmatpush1.bf16.msra.mxu1 %v3329_v25  ;;  %v211_v45 = vrot.slane %v206_v42, %v3366_v40  ;;  %v215_v49 = vrot.slane %v206_v42, %v3374_v43  ;;  %vm441_vm5 = vcmp.lt.s32.totalorder %v3387_v27, 192  ;;  %v394_v39 = vld [vmem:[#allocation8 + $0x18] sm:$0xff] }
  0x56   :  { %2459 = vmatprep.subr.bf16.mxu1 %v3333_v26  ;;  %v3403_v42 = vpack.c.bf16 %v394_v39, %v392_v38  ;;  %v398_v46 = vld [vmem:[#allocation8 + $0x38] sm:$0xff] }
  0x57   :  { %2376 = vmatmul.mubr.msk.f32.vlgmr.msra.gmra.mrb[0].mxu0 %vm218_vm4, %v200_v31  ;;  %v2846_v50 = vadd.f32 %v211_v45, %v102_v44  ;;  %v2848_v52 = vadd.f32 %v215_v49, %v106_v48  ;;  %v393_v44 = vld [vmem:[#allocation8 + $0x10] sm:$0xff]  ;;  %v396_v45 = vld [vmem:[#allocation8 + $0x28] sm:$0xff]  ;;  %v395_v49 = vld [vmem:[#allocation8 + $0x20] sm:$0xff] }
  0x58   :  { %301 = vmatprep.mubr.f32.mxu0 %v3160_v0  ;;  %v3405_v47 = vpack.c.bf16 %v393_v44, %v391_v41  ;;  %v3407_v48 = vpack.c.bf16 %v398_v46, %v396_v45  ;;  %2467 = vmatprep.subr.bf16.mxu0 %v3403_v42  ;;  %v422_v23 = vld [vmem:[#allocation8 + $0xf8] sm:$0xff] }
  0x59   :  { %2461 = vmatpush1.bf16.msra.mxu1 %v3341_v32 }
  0x5a   :  { %2463 = vmatprep.subr.bf16.mxu1 %v3344_v33  ;;  %2469 = vmatpush1.bf16.msra.mxu0 %v3405_v47 }
  0x5b   :  { %2377 = vmatmul.mubr.msk.f32.gmra.mrb[2].mxu0 %vm218_vm4, %v201_v36  ;;  %2471 = vmatprep.subr.bf16.mxu0 %v3407_v48 }
  0x5c   :  { %641 = vmatprep.mubr.f32.mxu0 %v3160_v0 }
  0x5d   :  { %2465 = vmatpush1.bf16.msra.mxu1 %v3351_v37 }
  0x5e   :  { %2499 = vmatprep.subr.bf16.mxu1 %v3311_v10 }
  0x60   :  { %514 = vmatmul.mubr.f32.vlgmr.msra.gmra.mrb[0].mxu1 %v3160_v0 }
  0x61   :  { %2501 = vmatpush1.bf16.msra.mxu1 %v3316_v17  ;;  %740 = vmatprep.mubr.f32.mxu1 %v3160_v0 }
  0x62   :  { %2503 = vmatprep.subr.bf16.mxu1 %v3321_v21 }
  0x65   :  { %2505 = vmatpush1.bf16.msra.mxu1 %v3329_v25 }
  0x66   :  { %2507 = vmatprep.subr.bf16.mxu1 %v3333_v26 }
  0x69   :  { %2509 = vmatpush1.bf16.msra.mxu1 %v3341_v32 }
  0x6a   :  { %2511 = vmatprep.subr.bf16.mxu1 %v3344_v33 }
  0x6d   :  { %2513 = vmatpush1.bf16.msra.mxu1 %v3351_v37 }
  0x6e   :  { %2515 = vmatprep.subr.bf16.mxu1 %v3403_v42 }
 0x12a   :  { %v297_v53 = vpop.f32.mrb[0].mxu0 }
 0x12b   :  { %v2847_v54 = vadd.f32 %v2846_v50, %v297_v53  ;;  %v299_v55 = vpop.f32.mrb[1].mxu0 }
 0x12c   :  { %v2849_v57 = vadd.f32 %v2848_v52, %v299_v55  ;;  %v399_v55 = vld [vmem:[#allocation8 + $0x40] sm:$0xff] }
 0x12e   :  { %v312_v58 = vcombine.low %v2847_v54, %v2849_v57  ;;  %v326_v59 = vcombine.high %v2847_v54, %v2849_v57  ;;  %v303_v60 = vpop.f32.mrb[2].mxu0  ;;  %v401_v57 = vld [vmem:[#allocation8 + $0x50] sm:$0xff] }
 0x12f   :  { %v2851_v61 = vadd.f32 %v2846_v50, %v303_v60  ;;  %v305_v62 = vpop.f32.mrb[3].mxu0  ;;  %v397_v50 = vld [vmem:[#allocation8 + $0x30] sm:$0xff]  ;;  %v3418_v60 = vpack.c.bf16 %v401_v57, %v399_v55 }
 0x130   :  { %v319_v63 = vrot.slane %v312_v58, %v3380_v56  ;;  %2378 = vst.sshfl [vmem:[#allocation2] sm:$0x33 pattern:$0x76325410] %v312_v58  ;;  %v333_v1 = vrot.slane %v326_v59, %v3380_v56  ;;  %v2853_v2 = vadd.f32 %v2848_v52, %v305_v62  ;;  %v402_v52 = vld [vmem:[#allocation8 + $0x58] sm:$0xff]  ;;  %v3412_v53 = vpack.c.bf16 %v397_v50, %v395_v49  ;;  %v404_v58 = vld [vmem:[#allocation8 + $0x68] sm:$0xff] }
 0x131   :  { %2379 = vst.sshfl [vmem:[#allocation2 + $0x8] sm:$0x33 pattern:$0x76325410] %v326_v59  ;;  %v3415_v54 = vpack.c.bf16 %v402_v52, %v400_v51  ;;  %v406_v59 = vld [vmem:[#allocation8 + $0x78] sm:$0xff]  ;;  %v403_v62 = vld [vmem:[#allocation8 + $0x60] sm:$0xff] }
 0x132   :  { %v322_v3 = vcombine.high %v319_v63, %v319_v63  ;;  %v337_v4 = vcombine.high %v333_v1, %v333_v1  ;;  %v345_v5 = vcombine.low %v2851_v61, %v2853_v2  ;;  %v360_v6 = vcombine.high %v2851_v61, %v2853_v2  ;;  %2473 = vmatpush1.bf16.msra.mxu0 %v3412_v53  ;;  %v405_v63 = vld [vmem:[#allocation8 + $0x70] sm:$0xff]  ;;  %v408_v1 = vld [vmem:[#allocation8 + $0x88] sm:$0xff]  ;;  %v410_v2 = vld [vmem:[#allocation8 + $0x98] sm:$0xff] }
 0x133   :  { %v515_v7 = vpop.f32.mrb[0].mxu1  ;;  %2475 = vmatprep.subr.bf16.mxu0 %v3415_v54  ;;  %v3421_v61 = vpack.c.bf16 %v406_v59, %v404_v58 }
 0x134   :  { %v517_v8 = vpop.f32.mrb[1].mxu1  ;;  %325 = vst [vmem:[#allocation2 + $0x4] sm:$0xf] %v322_v3  ;;  %340 = vst [vmem:[#allocation2 + $0xc] sm:$0xf] %v337_v4  ;;  %v352_v9 = vrot.slane %v345_v5, %v3380_v56  ;;  %v367_v11 = vrot.slane %v360_v6, %v3380_v56  ;;  %v3424_v3 = vpack.c.bf16 %v405_v63, %v403_v62 }
 0x135   :  { %2380 = vst.sshfl [vmem:[#allocation2 + $0x10] sm:$0x33 pattern:$0x76325410] %v345_v5  ;;  %v522_v12 = vcombine.low %v515_v7, %v517_v8  ;;  %v3427_v4 = vpack.c.bf16 %v410_v2, %v408_v1  ;;  %v407_v5 = vld [vmem:[#allocation8 + $0x80] sm:$0xff]  ;;  %v412_v7 = vld [vmem:[#allocation8 + $0xa8] sm:$0xff] }
 0x136   :  { %2381 = vst.sshfl [vmem:[#allocation2 + $0x18] sm:$0x33 pattern:$0x76325410] %v360_v6  ;;  %v356_v13 = vcombine.high %v352_v9, %v352_v9  ;;  %v371_v14 = vcombine.high %v367_v11, %v367_v11  ;;  %2477 = vmatpush1.bf16.msra.mxu0 %v3418_v60  ;;  %v409_v6 = vld [vmem:[#allocation8 + $0x90] sm:$0xff]  ;;  %v414_v8 = vld [vmem:[#allocation8 + $0xb8] sm:$0xff] }
 0x137   :  { %v529_v15 = vrot.slane %v522_v12, %v3380_v56  ;;  %v444_v16 = vld [vmem:[#allocation2] sm:$0xf]  ;;  %2479 = vmatprep.subr.bf16.mxu0 %v3421_v61  ;;  %v3430_v9 = vpack.c.bf16 %v409_v6, %v407_v5  ;;  %v3433_v11 = vpack.c.bf16 %v414_v8, %v412_v7 }
 0x138   :  { %359 = vst [vmem:[#allocation2 + $0x14] sm:$0xf] %v356_v13  ;;  %374 = vst [vmem:[#allocation2 + $0x1c] sm:$0xf] %v371_v14  ;;  %v411_v12 = vld [vmem:[#allocation8 + $0xa0] sm:$0xff]  ;;  %v413_v13 = vld [vmem:[#allocation8 + $0xb0] sm:$0xff] }
 0x139   :  { %v531_v18 = vadd.f32 %v529_v15, %v444_v16  ;;  %v416_v14 = vld [vmem:[#allocation8 + $0xc8] sm:$0xff]  ;;  %v418_v15 = vld [vmem:[#allocation8 + $0xd8] sm:$0xff]  ;;  %v3436_v16 = vpack.c.bf16 %v413_v13, %v411_v12 }
 0x13a   :  { %2481 = vmatpush1.bf16.msra.mxu0 %v3424_v3  ;;  %v423_v12 = vld [vmem:[%s3818_s8] sm:$0x3] }
 0x13b   :  { %v2382_v19 = vmul.f32 -1.442695, %v531_v18  ;;  %2483 = vmatprep.subr.bf16.mxu0 %v3427_v4  ;;  %v673_v52 = vld [vmem:[#allocation2 + $0x4] sm:$0xf]  ;;  %v3497_v13 = vrot.slane %v423_v12, %v3374_v43 }
 0x13d   :  { %2874 = vpow2.f32 %v2382_v19  ;;  %v415_v19 = vld [vmem:[#allocation8 + $0xc0] sm:$0xff] }
 0x13e   :  { %2876 = vtanh.f32 %v531_v18  ;;  %2485 = vmatpush1.bf16.msra.mxu0 %v3430_v9  ;;  %v3439_v18 = vpack.c.bf16 %v418_v15, %v416_v14  ;;  %v3501_v15 = vrot.slane %v423_v12, %v3366_v40 }
 0x13f   :  { %2487 = vmatprep.subr.bf16.mxu0 %v3433_v11 }
 0x142   :  { %2489 = vmatpush1.bf16.msra.mxu0 %v3436_v16 }
 0x143   :  { %2491 = vmatprep.subr.bf16.mxu0 %v3439_v18 }
 0x147   :  { %v2875_v20 = vpop.eup %2874 }
 0x148   :  { %v536_v22 = vadd.f32 1.0, %v2875_v20  ;;  %v2877_v24 = vpop.eup %2876  ;;  %v417_v20 = vld [vmem:[#allocation8 + $0xd0] sm:$0xff] }
 0x149   :  { %v546_v28 = vrot.slane %v2877_v24, %v3380_v56  ;;  %v3442_v24 = vpack.c.bf16 %v417_v20, %v415_v19 }
 0x14a   :  { %2878 = vrcp.f32 %v536_v22  ;;  %v420_v22 = vld [vmem:[#allocation8 + $0xe8] sm:$0xff] }
 0x14b   :  { %v547_v31 = vcombine.high %v546_v28, %v546_v28  ;;  %v3445_v28 = vpack.c.bf16 %v422_v23, %v420_v22  ;;  %2493 = vmatpush1.bf16.msra.mxu0 %v3442_v24 }
 0x14d   :  { %2495 = vmatprep.subr.bf16.mxu0 %v3445_v28 }
 0x154   :  { %v2879_v29 = vpop.eup %2878 }
 0x155   :  { %v3391_v30 = vrot.slane %v2879_v29, %v3380_v56  ;;  %v419_v29 = vld [vmem:[#allocation8 + $0xe0] sm:$0xff] }
 0x157   :  { %v558_v34 = vcombine.high %v3391_v30, %v3391_v30 }
 0x159   :  { %v3398_v35 = vsel %vm441_vm5, %v547_v31, %v558_v34  ;;  %v421_v31 = vld [vmem:[#allocation8 + $0xf0] sm:$0xff] }
 0x15a   :  { %v564_v36 = vmul.f32 %v3398_v35, %v3391_v30  ;;  %v3448_v34 = vpack.c.bf16 %v421_v31, %v419_v29 }
 0x15c   :  { %566 = vrot.lane.b32.xlu0 %v564_v36, %s3163_s4  ;;  %2497 = vmatpush1.bf16.msra.mxu0 %v3448_v34  ;;  %v563_v36 = vmul.f32 0.0, %v3391_v30 }
 0x15d   :  { %2547 = vmatprep.subr.bf16.mxu0 %v3311_v10 }
 0x1ce   :  { %v567_v38 = vpop.permute.xlu0 %566 }
 0x1cf   :  { %v3454_v39 = vadd.f32 %v567_v38, %v563_v36 }
 0x1d1   :  { %2880 = vtanh.f32 %v3454_v39 }
 0x1db   :  { %v2881_v41 = vpop.eup %2880 }
 0x1dc   :  { %v571_v44 = vmul.f32 %v2881_v41, %v3398_v35 }
 0x1de   :  { %573 = vrot.lane.b32.xlu0 %v571_v44, %s3163_s4 }
 0x250   :  { %v574_v45 = vpop.permute.xlu0 %573 }
 0x251   :  { %2383 = vmatmul.mubr.msk.f32.vlgmr.msra.gmra.mrb[4].mxu0 %vm445_vm6, %v574_v45  ;;  %2386 = vmatmul.mubr.msk.f32.vlgmr.msra.gmra.mrb[2].mxu1 %vm445_vm6, %v574_v45 }
 0x252   :  { %2549 = vmatpush1.bf16.msra.mxu0 %v3316_v17  ;;  %2517 = vmatpush1.bf16.msra.mxu1 %v3405_v47 }
 0x253   :  { %2551 = vmatprep.subr.bf16.mxu0 %v3321_v21  ;;  %2519 = vmatprep.subr.bf16.mxu1 %v3407_v48 }
 0x254   :  { %967 = vmatprep.mubr.f32.mxu0 %v3160_v0  ;;  %868 = vmatprep.mubr.f32.mxu1 %v3160_v0 }
 0x256   :  { %2553 = vmatpush1.bf16.msra.mxu0 %v3329_v25  ;;  %2521 = vmatpush1.bf16.msra.mxu1 %v3412_v53 }
 0x257   :  { %2555 = vmatprep.subr.bf16.mxu0 %v3333_v26  ;;  %2523 = vmatprep.subr.bf16.mxu1 %v3415_v54 }
 0x25a   :  { %2557 = vmatpush1.bf16.msra.mxu0 %v3341_v32  ;;  %2525 = vmatpush1.bf16.msra.mxu1 %v3418_v60 }
 0x25b   :  { %2559 = vmatprep.subr.bf16.mxu0 %v3344_v33  ;;  %2527 = vmatprep.subr.bf16.mxu1 %v3421_v61 }
 0x25e   :  { %2561 = vmatpush1.bf16.msra.mxu0 %v3351_v37  ;;  %2529 = vmatpush1.bf16.msra.mxu1 %v3424_v3 }
 0x25f   :  { %2531 = vmatprep.subr.bf16.mxu1 %v3427_v4  ;;  %2563 = vmatprep.subr.bf16.mxu0 %v3403_v42 }
 0x262   :  { %2533 = vmatpush1.bf16.msra.mxu1 %v3430_v9 }
 0x263   :  { %2535 = vmatprep.subr.bf16.mxu1 %v3433_v11 }
 0x266   :  { %2537 = vmatpush1.bf16.msra.mxu1 %v3436_v16 }
 0x267   :  { %2539 = vmatprep.subr.bf16.mxu1 %v3439_v18 }
 0x26a   :  { %2541 = vmatpush1.bf16.msra.mxu1 %v3442_v24 }
 0x26b   :  { %2543 = vmatprep.subr.bf16.mxu1 %v3445_v28 }
 0x26e   :  { %2545 = vmatpush1.bf16.msra.mxu1 %v3448_v34 }
 0x26f   :  { %2595 = vmatprep.subr.bf16.mxu1 %v3311_v10 }
 0x324   :  { %v643_v30 = vpop.f32.mrb[4].mxu0  ;;  %v742_v35 = vpop.f32.mrb[2].mxu1 }
 0x325   :  { %v645_v46 = vpop.f32.mrb[5].mxu0  ;;  %v744_v49 = vpop.f32.mrb[3].mxu1  ;;  %v644_v20 = vadd.f32 %v643_v30, %v3501_v15 }
 0x326   :  { %v749_v50 = vcombine.low %v742_v35, %v744_v49  ;;  %v646_v14 = vadd.f32 %v645_v46, %v3497_v13 }
 0x327   :  { %v2384_v22 = vmul.f32 -1.442695, %v644_v20 }
 0x328   :  { %v756_v51 = vrot.slane %v749_v50, %v3380_v56  ;;  %v2385_v19 = vmul.f32 -1.442695, %v646_v14 }
 0x32a   :  { %v758_v55 = vadd.f32 %v756_v51, %v673_v52 }
 0x32c   :  { %v2387_v57 = vmul.f32 -1.442695, %v758_v55 }
 0x32e   :  { %2882 = vpow2.f32 %v2387_v57 }
 0x32f   :  { %2884 = vtanh.f32 %v758_v55 }
 0x338   :  { %v2883_v58 = vpop.eup %2882 }
 0x339   :  { %v763_v59 = vadd.f32 1.0, %v2883_v58  ;;  %v2885_v62 = vpop.eup %2884 }
 0x33a   :  { %v773_v63 = vrot.slane %v2885_v62, %v3380_v56 }
 0x33b   :  { %2886 = vrcp.f32 %v763_v59 }
 0x33c   :  { %v774_v5 = vcombine.high %v773_v63, %v773_v63  ;;  %2888 = vpow2.f32 %v2385_v19 }
 0x33d   :  { %2890 = vpow2.f32 %v2384_v22 }
 0x345   :  { %v2887_v1 = vpop.eup %2886 }
 0x346   :  { %v784_v2 = vrot.slane %v2887_v1, %v3380_v56  ;;  %v2889_v23 = vpop.eup %2888 }
 0x347   :  { %v657_v29 = vadd.f32 1.0, %v2889_v23  ;;  %v2891_v36 = vpop.eup %2890 }
 0x348   :  { %v785_v6 = vcombine.high %v784_v2, %v784_v2  ;;  %v790_v31 = vmul.f32 %v784_v2, %v3454_v39  ;;  %v656_v43 = vadd.f32 1.0, %v2891_v36 }
 0x349   :  { %2892 = vrcp.f32 %v657_v29 }
 0x34a   :  { %v789_v7 = vsel %vm441_vm5, %v774_v5, %v785_v6 }
 0x34b   :  { %v791_v8 = vmul.f32 %v789_v7, %v784_v2  ;;  %v900_v2 = vld [vmem:[#allocation2 + $0x8] sm:$0xf] }
 0x34d   :  { %793 = vrot.lane.b32.xlu1 %v791_v8, %s3163_s4 }
 0x353   :  { %v2893_v40 = vpop.eup %2892 }
 0x3bf   :  { %v794_v38 = vpop.permute.xlu1 %793 }
 0x3c0   :  { %v3505_v41 = vadd.f32 %v794_v38, %v790_v31 }
 0x3c2   :  { %2894 = vtanh.f32 %v3505_v41 }
 0x3c3   :  { %2896 = vtanh.f32 %v646_v14 }
 0x3c4   :  { %2898 = vrcp.f32 %v656_v43 }
 0x3cc   :  { %v2895_v44 = vpop.eup %2894 }
 0x3cd   :  { %v2897_v45 = vpop.eup %2896  ;;  %v798_v30 = vmul.f32 %v2895_v44, %v789_v7 }
 0x3ce   :  { %v663_v35 = vsel %vm441_vm5, %v2897_v45, %v2893_v40  ;;  %v2899_v39 = vpop.eup %2898 }
 0x3cf   :  { %800 = vrot.lane.b32.xlu1 %v798_v30, %s3163_s4  ;;  %v665_v46 = vmul.f32 %v2899_v39, %v663_v35  ;;  %v664_v50 = vmul.f32 0.0, %v2899_v39 }
 0x3d3   :  { %667 = vrot.lane.b32.xlu1 %v665_v46, %s3163_s4 }
 0x441   :  { %v801_v49 = vpop.permute.xlu1 %800 }
 0x442   :  { %2390 = vmatmul.mubr.msk.f32.vlgmr.msra.gmra.mrb[6].mxu0 %vm445_vm6, %v801_v49 }
 0x443   :  { %2565 = vmatpush1.bf16.msra.mxu0 %v3405_v47  ;;  %1095 = vmatprep.mubr.f32.mxu0 %v3160_v0 }
 0x444   :  { %2567 = vmatprep.subr.bf16.mxu0 %v3407_v48 }
 0x445   :  { %v668_v51 = vpop.permute.xlu1 %667 }
 0x446   :  { %v3516_v52 = vadd.f32 %v668_v51, %v664_v50 }
 0x447   :  { %2569 = vmatpush1.bf16.msra.mxu0 %v3412_v53 }
 0x448   :  { %2900 = vtanh.f32 %v3516_v52  ;;  %2571 = vmatprep.subr.bf16.mxu0 %v3415_v54 }
 0x44b   :  { %2573 = vmatpush1.bf16.msra.mxu0 %v3418_v60 }
 0x44c   :  { %2575 = vmatprep.subr.bf16.mxu0 %v3421_v61 }
 0x44f   :  { %2577 = vmatpush1.bf16.msra.mxu0 %v3424_v3 }
 0x450   :  { %2579 = vmatprep.subr.bf16.mxu0 %v3427_v4 }
 0x452   :  { %v2901_v55 = vpop.eup %2900 }
 0x453   :  { %v672_v57 = vmul.f32 %v2901_v55, %v663_v35  ;;  %2581 = vmatpush1.bf16.msra.mxu0 %v3430_v9 }
 0x454   :  { %2583 = vmatprep.subr.bf16.mxu0 %v3433_v11 }
 0x455   :  { %v803_v58 = vsel %vm445_vm6, %v801_v49, %v672_v57 }
 0x456   :  { %869 = vmatmul.mubr.f32.vlgmr.msra.gmra.mrb[4].mxu1 %v803_v58 }
 0x457   :  { %2597 = vmatpush1.bf16.msra.mxu1 %v3316_v17  ;;  %2585 = vmatpush1.bf16.msra.mxu0 %v3436_v16 }
 0x458   :  { %2599 = vmatprep.subr.bf16.mxu1 %v3321_v21  ;;  %2587 = vmatprep.subr.bf16.mxu0 %v3439_v18 }
 0x459   :  { %1194 = vmatprep.mubr.f32.mxu1 %v3160_v0 }
 0x45b   :  { %2601 = vmatpush1.bf16.msra.mxu1 %v3329_v25  ;;  %2589 = vmatpush1.bf16.msra.mxu0 %v3442_v24 }
 0x45c   :  { %2603 = vmatprep.subr.bf16.mxu1 %v3333_v26  ;;  %2591 = vmatprep.subr.bf16.mxu0 %v3445_v28 }
 0x45f   :  { %2605 = vmatpush1.bf16.msra.mxu1 %v3341_v32  ;;  %2593 = vmatpush1.bf16.msra.mxu0 %v3448_v34 }
 0x460   :  { %2607 = vmatprep.subr.bf16.mxu1 %v3344_v33  ;;  %2643 = vmatprep.subr.bf16.mxu0 %v3311_v10 }
 0x463   :  { %2609 = vmatpush1.bf16.msra.mxu1 %v3351_v37 }
 0x464   :  { %2611 = vmatprep.subr.bf16.mxu1 %v3403_v42 }
 0x515   :  { %v969_v59 = vpop.f32.mrb[6].mxu0 }
 0x516   :  { %v971_v62 = vpop.f32.mrb[7].mxu0 }
 0x517   :  { %v976_v63 = vcombine.low %v969_v59, %v971_v62 }
 0x519   :  { %v983_v1 = vrot.slane %v976_v63, %v3380_v56 }
 0x51b   :  { %v985_v5 = vadd.f32 %v983_v1, %v900_v2 }
 0x51d   :  { %v2391_v6 = vmul.f32 -1.442695, %v985_v5 }
 0x51f   :  { %2902 = vpow2.f32 %v2391_v6 }
 0x520   :  { %2904 = vtanh.f32 %v985_v5 }
 0x529   :  { %v2903_v7 = vpop.eup %2902  ;;  %v870_v8 = vpop.f32.mrb[4].mxu1 }
 0x52a   :  { %v990_v12 = vadd.f32 1.0, %v2903_v7  ;;  %v871_v14 = vadd.f32 %v870_v8, %v3501_v15  ;;  %v872_v19 = vpop.f32.mrb[5].mxu1  ;;  %v2905_v29 = vpop.eup %2904 }
 0x52b   :  { %v873_v20 = vadd.f32 %v872_v19, %v3497_v13  ;;  %v1000_v31 = vrot.slane %v2905_v29, %v3380_v56 }
 0x52c   :  { %2906 = vrcp.f32 %v990_v12  ;;  %v2388_v22 = vmul.f32 -1.442695, %v871_v14 }
 0x52d   :  { %v2389_v23 = vmul.f32 -1.442695, %v873_v20  ;;  %v1001_v45 = vcombine.high %v1000_v31, %v1000_v31  ;;  %v1127_v31 = vld [vmem:[#allocation2 + $0xc] sm:$0xf] }
 0x52e   :  { %2908 = vpow2.f32 %v2388_v22 }
 0x52f   :  { %2910 = vpow2.f32 %v2389_v23 }
 0x530   :  { %2912 = vtanh.f32 %v873_v20 }
 0x536   :  { %v2907_v36 = vpop.eup %2906 }
 0x537   :  { %v1011_v38 = vrot.slane %v2907_v36, %v3380_v56 }
 0x538   :  { %v2909_v43 = vpop.eup %2908 }
 0x539   :  { %v2911_v40 = vpop.eup %2910  ;;  %v883_v44 = vadd.f32 1.0, %v2909_v43  ;;  %v1012_v30 = vcombine.high %v1011_v38, %v1011_v38  ;;  %v1017_v58 = vmul.f32 %v1011_v38, %v3505_v41 }
 0x53a   :  { %v884_v35 = vadd.f32 1.0, %v2911_v40  ;;  %v2913_v49 = vpop.eup %2912 }
 0x53b   :  { %v1016_v39 = vsel %vm441_vm5, %v1001_v45, %v1012_v30 }
 0x53c   :  { %2914 = vrcp.f32 %v884_v35  ;;  %v1018_v46 = vmul.f32 %v1016_v39, %v1011_v38 }
 0x53d   :  { %2916 = vrcp.f32 %v883_v44 }
 0x53e   :  { %1020 = vrot.lane.b32.xlu0 %v1018_v46, %s3163_s4 }
 0x546   :  { %v2915_v50 = vpop.eup %2914 }
 0x547   :  { %v2917_v51 = vpop.eup %2916  ;;  %v890_v55 = vsel %vm441_vm5, %v2913_v49, %v2915_v50 }
 0x548   :  { %v892_v57 = vmul.f32 %v2917_v51, %v890_v55  ;;  %v891_v5 = vmul.f32 %v2917_v51, %v3516_v52 }
 0x54a   :  { %894 = vrot.lane.b32.xlu1 %v892_v57, %s3163_s4 }
 0x5b0   :  { %v1021_v59 = vpop.permute.xlu0 %1020 }
 0x5b1   :  { %v3555_v62 = vadd.f32 %v1021_v59, %v1017_v58 }
 0x5b3   :  { %2918 = vtanh.f32 %v3555_v62 }
 0x5bc   :  { %v895_v2 = vpop.permute.xlu1 %894 }
 0x5bd   :  { %v2919_v63 = vpop.eup %2918  ;;  %v3560_v6 = vadd.f32 %v895_v2, %v891_v5 }
 0x5be   :  { %v1025_v1 = vmul.f32 %v2919_v63, %v1016_v39 }
 0x5bf   :  { %2920 = vtanh.f32 %v3560_v6 }
 0x5c0   :  { %1027 = vrot.lane.b32.xlu0 %v1025_v1, %s3163_s4 }
 0x5c9   :  { %v2921_v7 = vpop.eup %2920 }
 0x5ca   :  { %v899_v8 = vmul.f32 %v2921_v7, %v890_v55 }
 0x632   :  { %v1028_v12 = vpop.permute.xlu0 %1027 }
 0x633   :  { %v1030_v41 = vsel %vm445_vm6, %v1028_v12, %v899_v8  ;;  %2394 = vmatmul.mubr.msk.f32.vlgmr.msra.gmra.mrb[6].mxu1 %vm445_vm6, %v1028_v12 }
 0x634   :  { %1096 = vmatmul.mubr.f32.vlgmr.msra.gmra.mrb[8].mxu0 %v1030_v41  ;;  %2613 = vmatpush1.bf16.msra.mxu1 %v3405_v47 }
 0x635   :  { %2615 = vmatprep.subr.bf16.mxu1 %v3407_v48  ;;  %2645 = vmatpush1.bf16.msra.mxu0 %v3316_v17 }
 0x636   :  { %2647 = vmatprep.subr.bf16.mxu0 %v3321_v21  ;;  %1421 = vmatprep.mubr.f32.mxu0 %v3160_v0 }
 0x637   :  { %1322 = vmatprep.mubr.f32.mxu1 %v3160_v0 }
 0x638   :  { %2617 = vmatpush1.bf16.msra.mxu1 %v3412_v53 }
 0x639   :  { %2619 = vmatprep.subr.bf16.mxu1 %v3415_v54  ;;  %2649 = vmatpush1.bf16.msra.mxu0 %v3329_v25 }
 0x63a   :  { %2651 = vmatprep.subr.bf16.mxu0 %v3333_v26 }
 0x63c   :  { %2621 = vmatpush1.bf16.msra.mxu1 %v3418_v60 }
 0x63d   :  { %2623 = vmatprep.subr.bf16.mxu1 %v3421_v61  ;;  %2653 = vmatpush1.bf16.msra.mxu0 %v3341_v32 }
 0x63e   :  { %2655 = vmatprep.subr.bf16.mxu0 %v3344_v33 }
 0x640   :  { %2625 = vmatpush1.bf16.msra.mxu1 %v3424_v3 }
 0x641   :  { %2627 = vmatprep.subr.bf16.mxu1 %v3427_v4  ;;  %2657 = vmatpush1.bf16.msra.mxu0 %v3351_v37 }
 0x642   :  { %2659 = vmatprep.subr.bf16.mxu0 %v3403_v42 }
 0x644   :  { %2629 = vmatpush1.bf16.msra.mxu1 %v3430_v9 }
 0x645   :  { %2631 = vmatprep.subr.bf16.mxu1 %v3433_v11 }
 0x648   :  { %2633 = vmatpush1.bf16.msra.mxu1 %v3436_v16 }
 0x649   :  { %2635 = vmatprep.subr.bf16.mxu1 %v3439_v18 }
 0x64c   :  { %2637 = vmatpush1.bf16.msra.mxu1 %v3442_v24 }
 0x64d   :  { %2639 = vmatprep.subr.bf16.mxu1 %v3445_v28 }
 0x650   :  { %2641 = vmatpush1.bf16.msra.mxu1 %v3448_v34 }
 0x651   :  { %2691 = vmatprep.subr.bf16.mxu1 %v3311_v10 }
 0x706   :  { %v1196_v52 = vpop.f32.mrb[6].mxu1 }
 0x707   :  { %v1097_v14 = vpop.f32.mrb[8].mxu0  ;;  %v1198_v19 = vpop.f32.mrb[7].mxu1 }
 0x708   :  { %v1203_v20 = vcombine.low %v1196_v52, %v1198_v19  ;;  %v1099_v22 = vpop.f32.mrb[9].mxu0  ;;  %v1098_v43 = vadd.f32 %v1097_v14, %v3501_v15 }
 0x709   :  { %v1100_v23 = vadd.f32 %v1099_v22, %v3497_v13 }
 0x70a   :  { %v1210_v29 = vrot.slane %v1203_v20, %v3380_v56  ;;  %v2392_v44 = vmul.f32 -1.442695, %v1098_v43 }
 0x70b   :  { %v2393_v36 = vmul.f32 -1.442695, %v1100_v23 }
 0x70c   :  { %v1212_v38 = vadd.f32 %v1210_v29, %v1127_v31 }
 0x70d   :  { %2922 = vpow2.f32 %v2393_v36 }
 0x70e   :  { %v2395_v40 = vmul.f32 -1.442695, %v1212_v38 }
 0x710   :  { %2924 = vpow2.f32 %v2395_v40 }
 0x711   :  { %2926 = vpow2.f32 %v2392_v44 }
 0x712   :  { %2928 = vtanh.f32 %v1212_v38 }
 0x717   :  { %v2923_v45 = vpop.eup %2922 }
 0x718   :  { %v1111_v39 = vadd.f32 1.0, %v2923_v45 }
 0x71a   :  { %v2925_v30 = vpop.eup %2924 }
 0x71b   :  { %v1217_v35 = vadd.f32 1.0, %v2925_v30  ;;  %v2927_v46 = vpop.eup %2926 }
 0x71c   :  { %v1110_v49 = vadd.f32 1.0, %v2927_v46  ;;  %v2929_v50 = vpop.eup %2928 }
 0x71d   :  { %2930 = vrcp.f32 %v1217_v35  ;;  %v1227_v51 = vrot.slane %v2929_v50, %v3380_v56 }
 0x71e   :  { %2932 = vrcp.f32 %v1111_v39  ;;  %v1354_v39 = vld [vmem:[#allocation2 + $0x10] sm:$0xf] }
 0x71f   :  { %2934 = vtanh.f32 %v1100_v23  ;;  %v1228_v58 = vcombine.high %v1227_v51, %v1227_v51 }
 0x720   :  { %2936 = vrcp.f32 %v1110_v49 }
 0x727   :  { %v2931_v55 = vpop.eup %2930 }
 0x728   :  { %v1238_v57 = vrot.slane %v2931_v55, %v3380_v56  ;;  %v2933_v63 = vpop.eup %2932 }
 0x729   :  { %v2935_v2 = vpop.eup %2934 }
 0x72a   :  { %v1239_v59 = vcombine.high %v1238_v57, %v1238_v57  ;;  %v1117_v7 = vsel %vm441_vm5, %v2935_v2, %v2933_v63  ;;  %v2937_v8 = vpop.eup %2936  ;;  %v1244_v41 = vmul.f32 %v1238_v57, %v3555_v62 }
 0x72b   :  { %v1119_v12 = vmul.f32 %v2937_v8, %v1117_v7  ;;  %v1118_v23 = vmul.f32 %v2937_v8, %v3560_v6 }
 0x72c   :  { %v1243_v1 = vsel %vm441_vm5, %v1228_v58, %v1239_v59 }
 0x72d   :  { %v1245_v5 = vmul.f32 %v1243_v1, %v1238_v57 }
 0x72f   :  { %1247 = vrot.lane.b32.xlu0 %v1245_v5, %s3163_s4 }
 0x733   :  { %1121 = vrot.lane.b32.xlu0 %v1119_v12, %s3163_s4 }
 0x7a1   :  { %v1248_v52 = vpop.permute.xlu0 %1247 }
 0x7a2   :  { %v3603_v14 = vadd.f32 %v1248_v52, %v1244_v41 }
 0x7a4   :  { %2938 = vtanh.f32 %v3603_v14 }
 0x7a5   :  { %v1122_v22 = vpop.permute.xlu0 %1121 }
 0x7a6   :  { %v3608_v29 = vadd.f32 %v1122_v22, %v1118_v23 }
 0x7a8   :  { %2940 = vtanh.f32 %v3608_v29 }
 0x7ae   :  { %v2939_v19 = vpop.eup %2938 }
 0x7af   :  { %v1252_v20 = vmul.f32 %v2939_v19, %v1243_v1 }
 0x7b1   :  { %1254 = vrot.lane.b32.xlu1 %v1252_v20, %s3163_s4 }
 0x7b2   :  { %v2941_v31 = vpop.eup %2940 }
 0x7b3   :  { %v1126_v36 = vmul.f32 %v2941_v31, %v1117_v7 }
 0x823   :  { %v1255_v38 = vpop.permute.xlu1 %1254 }
 0x824   :  { %v1257_v62 = vsel %vm445_vm6, %v1255_v38, %v1126_v36  ;;  %2398 = vmatmul.mubr.msk.f32.vlgmr.msra.gmra.mrb[10].mxu0 %vm445_vm6, %v1255_v38 }
 0x825   :  { %1323 = vmatmul.mubr.f32.vlgmr.msra.gmra.mrb[8].mxu1 %v1257_v62  ;;  %2661 = vmatpush1.bf16.msra.mxu0 %v3405_v47 }
 0x826   :  { %2663 = vmatprep.subr.bf16.mxu0 %v3407_v48  ;;  %2693 = vmatpush1.bf16.msra.mxu1 %v3316_v17 }
 0x827   :  { %2695 = vmatprep.subr.bf16.mxu1 %v3321_v21  ;;  %1648 = vmatprep.mubr.f32.mxu1 %v3160_v0 }
 0x828   :  { %1549 = vmatprep.mubr.f32.mxu0 %v3160_v0 }
 0x829   :  { %2665 = vmatpush1.bf16.msra.mxu0 %v3412_v53 }
 0x82a   :  { %2667 = vmatprep.subr.bf16.mxu0 %v3415_v54  ;;  %2697 = vmatpush1.bf16.msra.mxu1 %v3329_v25 }
 0x82b   :  { %2699 = vmatprep.subr.bf16.mxu1 %v3333_v26 }
 0x82d   :  { %2669 = vmatpush1.bf16.msra.mxu0 %v3418_v60 }
 0x82e   :  { %2671 = vmatprep.subr.bf16.mxu0 %v3421_v61  ;;  %2701 = vmatpush1.bf16.msra.mxu1 %v3341_v32 }
 0x82f   :  { %2703 = vmatprep.subr.bf16.mxu1 %v3344_v33 }
 0x831   :  { %2673 = vmatpush1.bf16.msra.mxu0 %v3424_v3 }
 0x832   :  { %2675 = vmatprep.subr.bf16.mxu0 %v3427_v4  ;;  %2705 = vmatpush1.bf16.msra.mxu1 %v3351_v37 }
 0x833   :  { %2707 = vmatprep.subr.bf16.mxu1 %v3403_v42 }
 0x835   :  { %2677 = vmatpush1.bf16.msra.mxu0 %v3430_v9 }
 0x836   :  { %2679 = vmatprep.subr.bf16.mxu0 %v3433_v11 }
 0x839   :  { %2681 = vmatpush1.bf16.msra.mxu0 %v3436_v16 }
 0x83a   :  { %2683 = vmatprep.subr.bf16.mxu0 %v3439_v18 }
 0x83d   :  { %2685 = vmatpush1.bf16.msra.mxu0 %v3442_v24 }
 0x83e   :  { %2687 = vmatprep.subr.bf16.mxu0 %v3445_v28 }
 0x841   :  { %2689 = vmatpush1.bf16.msra.mxu0 %v3448_v34 }
 0x842   :  { %2739 = vmatprep.subr.bf16.mxu0 %v3311_v10 }
 0x8f7   :  { %v1423_v6 = vpop.f32.mrb[10].mxu0 }
 0x8f8   :  { %v1324_v43 = vpop.f32.mrb[8].mxu1  ;;  %v1425_v40 = vpop.f32.mrb[11].mxu0 }
 0x8f9   :  { %v1430_v44 = vcombine.low %v1423_v6, %v1425_v40  ;;  %v1326_v45 = vpop.f32.mrb[9].mxu1  ;;  %v1325_v50 = vadd.f32 %v1324_v43, %v3501_v15 }
 0x8fa   :  { %v1327_v30 = vadd.f32 %v1326_v45, %v3497_v13 }
 0x8fb   :  { %v1437_v35 = vrot.slane %v1430_v44, %v3380_v56  ;;  %v2396_v55 = vmul.f32 -1.442695, %v1325_v50 }
 0x8fc   :  { %v2397_v46 = vmul.f32 -1.442695, %v1327_v30 }
 0x8fd   :  { %v1439_v49 = vadd.f32 %v1437_v35, %v1354_v39 }
 0x8fe   :  { %2942 = vpow2.f32 %v2397_v46 }
 0x8ff   :  { %v2399_v51 = vmul.f32 -1.442695, %v1439_v49 }
 0x901   :  { %2944 = vpow2.f32 %v2399_v51 }
 0x902   :  { %2946 = vpow2.f32 %v2396_v55 }
 0x903   :  { %2948 = vtanh.f32 %v1439_v49 }
 0x908   :  { %v2943_v57 = vpop.eup %2942 }
 0x909   :  { %v1338_v63 = vadd.f32 1.0, %v2943_v57 }
 0x90b   :  { %v2945_v58 = vpop.eup %2944 }
 0x90c   :  { %v1444_v59 = vadd.f32 1.0, %v2945_v58  ;;  %v2947_v1 = vpop.eup %2946 }
 0x90d   :  { %v1337_v2 = vadd.f32 1.0, %v2947_v1  ;;  %v2949_v5 = vpop.eup %2948 }
 0x90e   :  { %2950 = vrcp.f32 %v1444_v59  ;;  %v1454_v7 = vrot.slane %v2949_v5, %v3380_v56 }
 0x90f   :  { %2952 = vrcp.f32 %v1338_v63  ;;  %v1581_v63 = vld [vmem:[#allocation2 + $0x14] sm:$0xf] }
 0x910   :  { %2954 = vtanh.f32 %v1327_v30  ;;  %v1455_v41 = vcombine.high %v1454_v7, %v1454_v7 }
 0x911   :  { %2956 = vrcp.f32 %v1337_v2 }
 0x918   :  { %v2951_v8 = vpop.eup %2950 }
 0x919   :  { %v1465_v12 = vrot.slane %v2951_v8, %v3380_v56  ;;  %v2953_v19 = vpop.eup %2952 }
 0x91a   :  { %v2955_v22 = vpop.eup %2954 }
 0x91b   :  { %v1466_v52 = vcombine.high %v1465_v12, %v1465_v12  ;;  %v1344_v31 = vsel %vm441_vm5, %v2955_v22, %v2953_v19  ;;  %v2957_v36 = vpop.eup %2956  ;;  %v1471_v62 = vmul.f32 %v1465_v12, %v3603_v14 }
 0x91c   :  { %v1346_v38 = vmul.f32 %v2957_v36, %v1344_v31  ;;  %v1345_v30 = vmul.f32 %v2957_v36, %v3608_v29 }
 0x91d   :  { %v1470_v20 = vsel %vm441_vm5, %v1455_v41, %v1466_v52 }
 0x91e   :  { %v1472_v23 = vmul.f32 %v1470_v20, %v1465_v12 }
 0x920   :  { %1474 = vrot.lane.b32.xlu1 %v1472_v23, %s3163_s4 }
 0x924   :  { %1348 = vrot.lane.b32.xlu1 %v1346_v38, %s3163_s4 }
 0x992   :  { %v1475_v6 = vpop.permute.xlu1 %1474 }
 0x993   :  { %v3651_v43 = vadd.f32 %v1475_v6, %v1471_v62 }
 0x995   :  { %2958 = vtanh.f32 %v3651_v43 }
 0x996   :  { %v1349_v45 = vpop.permute.xlu1 %1348 }
 0x997   :  { %v3656_v35 = vadd.f32 %v1349_v45, %v1345_v30 }
 0x999   :  { %2960 = vtanh.f32 %v3656_v35 }
 0x99f   :  { %v2959_v40 = vpop.eup %2958 }
 0x9a0   :  { %v1479_v44 = vmul.f32 %v2959_v40, %v1470_v20 }
 0x9a2   :  { %1481 = vrot.lane.b32.xlu0 %v1479_v44, %s3163_s4 }
 0x9a3   :  { %v2961_v39 = vpop.eup %2960 }
 0x9a4   :  { %v1353_v46 = vmul.f32 %v2961_v39, %v1344_v31 }
 0xa14   :  { %v1482_v49 = vpop.permute.xlu0 %1481 }
 0xa15   :  { %v1484_v14 = vsel %vm445_vm6, %v1482_v49, %v1353_v46  ;;  %2402 = vmatmul.mubr.msk.f32.vlgmr.msra.gmra.mrb[10].mxu1 %vm445_vm6, %v1482_v49 }
 0xa16   :  { %1550 = vmatmul.mubr.f32.vlgmr.msra.gmra.mrb[12].mxu0 %v1484_v14  ;;  %2709 = vmatpush1.bf16.msra.mxu1 %v3405_v47 }
 0xa17   :  { %2711 = vmatprep.subr.bf16.mxu1 %v3407_v48  ;;  %2741 = vmatpush1.bf16.msra.mxu0 %v3316_v17 }
 0xa18   :  { %2743 = vmatprep.subr.bf16.mxu0 %v3321_v21  ;;  %1875 = vmatprep.mubr.f32.mxu0 %v3160_v0 }
 0xa19   :  { %1776 = vmatprep.mubr.f32.mxu1 %v3160_v0 }
 0xa1a   :  { %2713 = vmatpush1.bf16.msra.mxu1 %v3412_v53 }
 0xa1b   :  { %2715 = vmatprep.subr.bf16.mxu1 %v3415_v54  ;;  %2745 = vmatpush1.bf16.msra.mxu0 %v3329_v25 }
 0xa1c   :  { %2747 = vmatprep.subr.bf16.mxu0 %v3333_v26 }
 0xa1e   :  { %2717 = vmatpush1.bf16.msra.mxu1 %v3418_v60 }
 0xa1f   :  { %2719 = vmatprep.subr.bf16.mxu1 %v3421_v61  ;;  %2749 = vmatpush1.bf16.msra.mxu0 %v3341_v32 }
 0xa20   :  { %2751 = vmatprep.subr.bf16.mxu0 %v3344_v33 }
 0xa22   :  { %2721 = vmatpush1.bf16.msra.mxu1 %v3424_v3 }
 0xa23   :  { %2723 = vmatprep.subr.bf16.mxu1 %v3427_v4  ;;  %2753 = vmatpush1.bf16.msra.mxu0 %v3351_v37 }
 0xa24   :  { %2755 = vmatprep.subr.bf16.mxu0 %v3403_v42 }
 0xa26   :  { %2725 = vmatpush1.bf16.msra.mxu1 %v3430_v9 }
 0xa27   :  { %2727 = vmatprep.subr.bf16.mxu1 %v3433_v11 }
 0xa2a   :  { %2729 = vmatpush1.bf16.msra.mxu1 %v3436_v16 }
 0xa2b   :  { %2731 = vmatprep.subr.bf16.mxu1 %v3439_v18 }
 0xa2e   :  { %2733 = vmatpush1.bf16.msra.mxu1 %v3442_v24 }
 0xa2f   :  { %2735 = vmatprep.subr.bf16.mxu1 %v3445_v28 }
 0xa32   :  { %2737 = vmatpush1.bf16.msra.mxu1 %v3448_v34 }
 0xa33   :  { %2787 = vmatprep.subr.bf16.mxu1 %v3311_v10 }
 0xae8   :  { %v1650_v29 = vpop.f32.mrb[10].mxu1 }
 0xae9   :  { %v1551_v50 = vpop.f32.mrb[12].mxu0  ;;  %v1652_v51 = vpop.f32.mrb[11].mxu1 }
 0xaea   :  { %v1657_v55 = vcombine.low %v1650_v29, %v1652_v51  ;;  %v1553_v57 = vpop.f32.mrb[13].mxu0  ;;  %v1552_v5 = vadd.f32 %v1551_v50, %v3501_v15 }
 0xaeb   :  { %v1554_v58 = vadd.f32 %v1553_v57, %v3497_v13 }
 0xaec   :  { %v1664_v59 = vrot.slane %v1657_v55, %v3380_v56  ;;  %v2400_v8 = vmul.f32 -1.442695, %v1552_v5 }
 0xaed   :  { %v2401_v1 = vmul.f32 -1.442695, %v1554_v58 }
 0xaee   :  { %v1666_v2 = vadd.f32 %v1664_v59, %v1581_v63 }
 0xaef   :  { %2962 = vpow2.f32 %v2401_v1 }
 0xaf0   :  { %v2403_v7 = vmul.f32 -1.442695, %v1666_v2 }
 0xaf2   :  { %2964 = vpow2.f32 %v2403_v7 }
 0xaf3   :  { %2966 = vpow2.f32 %v2400_v8 }
 0xaf4   :  { %2968 = vtanh.f32 %v1666_v2 }
 0xaf9   :  { %v2963_v10 = vpop.eup %2962 }
 0xafa   :  { %v1565_v52 = vadd.f32 1.0, %v2963_v10 }
 0xafc   :  { %v2965_v12 = vpop.eup %2964 }
 0xafd   :  { %v1671_v41 = vadd.f32 1.0, %v2965_v12  ;;  %v2967_v19 = vpop.eup %2966 }
 0xafe   :  { %v1564_v20 = vadd.f32 1.0, %v2967_v19  ;;  %v2969_v22 = vpop.eup %2968 }
 0xaff   :  { %2970 = vrcp.f32 %v1671_v41  ;;  %v1681_v23 = vrot.slane %v2969_v22, %v3380_v56 }
 0xb00   :  { %2972 = vrcp.f32 %v1565_v52 }
 0xb01   :  { %2974 = vtanh.f32 %v1554_v58  ;;  %v1682_v38 = vcombine.high %v1681_v23, %v1681_v23 }
 0xb02   :  { %2976 = vrcp.f32 %v1564_v20 }
 0xb09   :  { %v2971_v31 = vpop.eup %2970 }
 0xb0a   :  { %v1692_v36 = vrot.slane %v2971_v31, %v3380_v56  ;;  %v2973_v6 = vpop.eup %2972 }
 0xb0b   :  { %v2975_v44 = vpop.eup %2974 }
 0xb0c   :  { %v1693_v62 = vcombine.high %v1692_v36, %v1692_v36  ;;  %v1571_v30 = vsel %vm441_vm5, %v2975_v44, %v2973_v6  ;;  %v2977_v39 = vpop.eup %2976  ;;  %v1698_v49 = vmul.f32 %v1692_v36, %v3651_v43 }
 0xb0d   :  { %v1573_v46 = vmul.f32 %v2977_v39, %v1571_v30  ;;  %v1572_v57 = vmul.f32 %v2977_v39, %v3656_v35 }
 0xb0e   :  { %v1697_v40 = vsel %vm441_vm5, %v1682_v38, %v1693_v62 }
 0xb0f   :  { %v1699_v45 = vmul.f32 %v1697_v40, %v1692_v36 }
 0xb11   :  { %1701 = vrot.lane.b32.xlu0 %v1699_v45, %s3163_s4 }
 0xb15   :  { %1575 = vrot.lane.b32.xlu0 %v1573_v46, %s3163_s4 }
 0xb83   :  { %v1702_v14 = vpop.permute.xlu0 %1701 }
 0xb84   :  { %v3699_v29 = vadd.f32 %v1702_v14, %v1698_v49 }
 0xb86   :  { %2978 = vtanh.f32 %v3699_v29 }
 0xb87   :  { %v1576_v55 = vpop.permute.xlu0 %1575 }
 0xb88   :  { %v3704_v58 = vadd.f32 %v1576_v55, %v1572_v57 }
 0xb8a   :  { %2980 = vtanh.f32 %v3704_v58 }
 0xb90   :  { %v2979_v50 = vpop.eup %2978 }
 0xb91   :  { %v1706_v51 = vmul.f32 %v2979_v50, %v1697_v40 }
 0xb93   :  { %1708 = vrot.lane.b32.xlu1 %v1706_v51, %s3163_s4 }
 0xb94   :  { %v2981_v59 = vpop.eup %2980 }
 0xb95   :  { %v1580_v63 = vmul.f32 %v2981_v59, %v1571_v30 }
 0xc05   :  { %v1709_v1 = vpop.permute.xlu1 %1708 }
 0xc06   :  { %v1711_v43 = vsel %vm445_vm6, %v1709_v1, %v1580_v63  ;;  %2406 = vmatmul.mubr.msk.f32.vlgmr.msra.gmra.mrb[14].mxu0 %vm445_vm6, %v1709_v1 }
 0xc07   :  { %1777 = vmatmul.mubr.f32.vlgmr.msra.gmra.mrb[12].mxu1 %v1711_v43  ;;  %2757 = vmatpush1.bf16.msra.mxu0 %v3405_v47 }
 0xc08   :  { %2759 = vmatprep.subr.bf16.mxu0 %v3407_v48  ;;  %2789 = vmatpush1.bf16.msra.mxu1 %v3316_v17 }
 0xc09   :  { %2791 = vmatprep.subr.bf16.mxu1 %v3321_v21  ;;  %2102 = vmatprep.mubr.f32.mxu1 %v3160_v0 }
 0xc0a   :  { %2003 = vmatprep.mubr.f32.mxu0 %v3160_v0 }
 0xc0b   :  { %2761 = vmatpush1.bf16.msra.mxu0 %v3412_v53 }
 0xc0c   :  { %2763 = vmatprep.subr.bf16.mxu0 %v3415_v54  ;;  %2793 = vmatpush1.bf16.msra.mxu1 %v3329_v25 }
 0xc0d   :  { %2795 = vmatprep.subr.bf16.mxu1 %v3333_v26 }
 0xc0f   :  { %2765 = vmatpush1.bf16.msra.mxu0 %v3418_v60 }
 0xc10   :  { %2767 = vmatprep.subr.bf16.mxu0 %v3421_v61  ;;  %2797 = vmatpush1.bf16.msra.mxu1 %v3341_v32 }
 0xc11   :  { %2799 = vmatprep.subr.bf16.mxu1 %v3344_v33 }
 0xc13   :  { %2769 = vmatpush1.bf16.msra.mxu0 %v3424_v3 }
 0xc14   :  { %2771 = vmatprep.subr.bf16.mxu0 %v3427_v4  ;;  %2801 = vmatpush1.bf16.msra.mxu1 %v3351_v37 }
 0xc15   :  { %2803 = vmatprep.subr.bf16.mxu1 %v3403_v42  ;;  %v1808_v42 = vld [vmem:[#allocation2 + $0x18] sm:$0xf] }
 0xc17   :  { %2773 = vmatpush1.bf16.msra.mxu0 %v3430_v9 }
 0xc18   :  { %2775 = vmatprep.subr.bf16.mxu0 %v3433_v11 }
 0xc1b   :  { %2777 = vmatpush1.bf16.msra.mxu0 %v3436_v16 }
 0xc1c   :  { %2779 = vmatprep.subr.bf16.mxu0 %v3439_v18 }
 0xc1f   :  { %2781 = vmatpush1.bf16.msra.mxu0 %v3442_v24 }
 0xc20   :  { %2783 = vmatprep.subr.bf16.mxu0 %v3445_v28 }
 0xc23   :  { %2785 = vmatpush1.bf16.msra.mxu0 %v3448_v34 }
 0xcd9   :  { %v1877_v17 = vpop.f32.mrb[14].mxu0 }
 0xcda   :  { %v1778_v21 = vpop.f32.mrb[12].mxu1  ;;  %v1879_v25 = vpop.f32.mrb[15].mxu0 }
 0xcdb   :  { %v1884_v26 = vcombine.low %v1877_v17, %v1879_v25  ;;  %v1780_v32 = vpop.f32.mrb[13].mxu1  ;;  %v1779_v5 = vadd.f32 %v1778_v21, %v3501_v15 }
 0xcdc   :  { %v1781_v33 = vadd.f32 %v1780_v32, %v3497_v13 }
 0xcdd   :  { %v1891_v37 = vrot.slane %v1884_v26, %v3380_v56  ;;  %v2404_v8 = vmul.f32 -1.442695, %v1779_v5 }
 0xcde   :  { %v2405_v35 = vmul.f32 -1.442695, %v1781_v33 }
 0xcdf   :  { %v1893_v2 = vadd.f32 %v1891_v37, %v1808_v42 }
 0xce0   :  { %2982 = vpow2.f32 %v2405_v35 }
 0xce1   :  { %v2407_v7 = vmul.f32 -1.442695, %v1893_v2 }
 0xce3   :  { %2984 = vpow2.f32 %v2407_v7 }
 0xce4   :  { %2986 = vpow2.f32 %v2404_v8 }
 0xce5   :  { %2988 = vtanh.f32 %v1893_v2 }
 0xcea   :  { %v2983_v10 = vpop.eup %2982 }
 0xceb   :  { %v1792_v52 = vadd.f32 1.0, %v2983_v10 }
 0xced   :  { %v2985_v12 = vpop.eup %2984 }
 0xcee   :  { %v1898_v41 = vadd.f32 1.0, %v2985_v12  ;;  %v2987_v19 = vpop.eup %2986 }
 0xcef   :  { %v1791_v20 = vadd.f32 1.0, %v2987_v19  ;;  %v2989_v22 = vpop.eup %2988 }
 0xcf0   :  { %2990 = vrcp.f32 %v1898_v41  ;;  %v1908_v23 = vrot.slane %v2989_v22, %v3380_v56 }
 0xcf1   :  { %2992 = vrcp.f32 %v1792_v52 }
 0xcf2   :  { %2994 = vtanh.f32 %v1781_v33  ;;  %v1909_v38 = vcombine.high %v1908_v23, %v1908_v23 }
 0xcf3   :  { %2996 = vrcp.f32 %v1791_v20 }
 0xcfa   :  { %v2991_v31 = vpop.eup %2990 }
 0xcfb   :  { %v1919_v36 = vrot.slane %v2991_v31, %v3380_v56  ;;  %v2993_v6 = vpop.eup %2992 }
 0xcfc   :  { %v2995_v44 = vpop.eup %2994 }
 0xcfd   :  { %v1920_v62 = vcombine.high %v1919_v36, %v1919_v36  ;;  %v1798_v30 = vsel %vm441_vm5, %v2995_v44, %v2993_v6  ;;  %v2997_v39 = vpop.eup %2996  ;;  %v1925_v49 = vmul.f32 %v1919_v36, %v3699_v29 }
 0xcfe   :  { %v1800_v46 = vmul.f32 %v2997_v39, %v1798_v30  ;;  %v1799_v59 = vmul.f32 %v2997_v39, %v3704_v58 }
 0xcff   :  { %v1924_v40 = vsel %vm441_vm5, %v1909_v38, %v1920_v62 }
 0xd00   :  { %v1926_v45 = vmul.f32 %v1924_v40, %v1919_v36 }
 0xd02   :  { %1928 = vrot.lane.b32.xlu1 %v1926_v45, %s3163_s4 }
 0xd06   :  { %1802 = vrot.lane.b32.xlu1 %v1800_v46, %s3163_s4 }
 0xd74   :  { %v1929_v14 = vpop.permute.xlu1 %1928 }
 0xd75   :  { %v3746_v50 = vadd.f32 %v1929_v14, %v1925_v49 }
 0xd77   :  { %2998 = vtanh.f32 %v3746_v50 }
 0xd78   :  { %v1803_v57 = vpop.permute.xlu1 %1802 }
 0xd79   :  { %v3751_v63 = vadd.f32 %v1803_v57, %v1799_v59 }
 0xd7b   :  { %3000 = vtanh.f32 %v3751_v63 }
 0xd81   :  { %v2999_v51 = vpop.eup %2998 }
 0xd82   :  { %v1933_v55 = vmul.f32 %v2999_v51, %v1924_v40 }
 0xd84   :  { %1935 = vrot.lane.b32.xlu0 %v1933_v55, %s3163_s4 }
 0xd85   :  { %v3001_v1 = vpop.eup %3000 }
 0xd86   :  { %v1807_v43 = vmul.f32 %v3001_v1, %v1798_v30 }
 0xdf6   :  { %v1936_v17 = vpop.permute.xlu0 %1935 }
 0xdf7   :  { %v1938_v29 = vsel %vm445_vm6, %v1936_v17, %v1807_v43  ;;  %2410 = vmatmul.mubr.msk.f32.vlgmr.msra.gmra.mrb[14].mxu1 %vm445_vm6, %v1936_v17  ;;  %v2263_v17 = vld [vmem:[#allocation9 + $0x8] sm:$0xff] }
 0xdf8   :  { %2004 = vmatmul.mubr.f32.vlgmr.msra.gmra.mrb[16].mxu0 %v1938_v29  ;;  %2805 = vmatpush1.bf16.msra.mxu1 %v3405_v47  ;;  %v2264_v29 = vld [vmem:[#allocation9 + $0x10] sm:$0xff] }
 0xdf9   :  { %2807 = vmatprep.subr.bf16.mxu1 %v3407_v48  ;;  %2230 = vmatprep.mubr.f32.mxu1 %v3160_v0 }
 0xdfa   :  { %2441 = vmatprep.mubr.msk.f32.mxu0 %vm3165_vm7, %v3160_v0 }
 0xdfc   :  { %2809 = vmatpush1.bf16.msra.mxu1 %v3412_v53 }
 0xdfd   :  { %2811 = vmatprep.subr.bf16.mxu1 %v3415_v54 }
 0xe00   :  { %2813 = vmatpush1.bf16.msra.mxu1 %v3418_v60 }
 0xe01   :  { %2815 = vmatprep.subr.bf16.mxu1 %v3421_v61 }
 0xe04   :  { %2817 = vmatpush1.bf16.msra.mxu1 %v3424_v3 }
 0xe05   :  { %2819 = vmatprep.subr.bf16.mxu1 %v3427_v4 }
 0xe08   :  { %2821 = vmatpush1.bf16.msra.mxu1 %v3430_v9 }
 0xe09   :  { %2823 = vmatprep.subr.bf16.mxu1 %v3433_v11  ;;  %v2035_v11 = vld [vmem:[#allocation2 + $0x1c] sm:$0xf] }
 0xe0c   :  { %2825 = vmatpush1.bf16.msra.mxu1 %v3436_v16 }
 0xe0d   :  { %2827 = vmatprep.subr.bf16.mxu1 %v3439_v18 }
 0xe10   :  { %2829 = vmatpush1.bf16.msra.mxu1 %v3442_v24 }
 0xe11   :  { %2831 = vmatprep.subr.bf16.mxu1 %v3445_v28 }
 0xe14   :  { %2833 = vmatpush1.bf16.msra.mxu1 %v3448_v34 }
 0xeca   :  { %v2104_v47 = vpop.f32.mrb[14].mxu1 }
 0xecb   :  { %v2005_v48 = vpop.f32.mrb[16].mxu0  ;;  %v2106_v53 = vpop.f32.mrb[15].mxu1 }
 0xecc   :  { %v2006_v54 = vadd.f32 %v2005_v48, %v3501_v15  ;;  %v2111_v60 = vcombine.low %v2104_v47, %v2106_v53  ;;  %v2007_v61 = vpop.f32.mrb[17].mxu0  ;;  %v3164_v47 = vmov 0.0|0.0   ;;  %v2265_v53 = vld [vmem:[#allocation9 + $0x18] sm:$0xff] }
 0xecd   :  { %v2008_v3 = vadd.f32 %v2007_v61, %v3497_v13  ;;  %2834 = vmatprep.subr.bf16.mxu0 %v3164_v47  ;;  %v2267_v61 = vld [vmem:[#allocation9 + $0x28] sm:$0xff] }
 0xece   :  { %v2408_v4 = vmul.f32 -1.442695, %v2006_v54  ;;  %v2118_v9 = vrot.slane %v2111_v60, %v3380_v56  ;;  %v2838_v54 = vpack.c.bf16 %v2265_v53, %v2264_v29  ;;  %v2266_v60 = vld [vmem:[#allocation9 + $0x20] sm:$0xff] }
 0xecf   :  { %v2409_v16 = vmul.f32 -1.442695, %v2008_v3  ;;  %v2841_v27 = vpack.c.bf16 %v2267_v61, %v2266_v60 }
 0xed0   :  { %3002 = vpow2.f32 %v2408_v4  ;;  %v2120_v18 = vadd.f32 %v2118_v9, %v2035_v11  ;;  %v2269_v4 = vld [vmem:[#allocation9 + $0x38] sm:$0xff] }
 0xed1   :  { %3004 = vpow2.f32 %v2409_v16 }
 0xed2   :  { %v2411_v24 = vmul.f32 -1.442695, %v2120_v18 }
 0xed4   :  { %3006 = vpow2.f32 %v2411_v24 }
 0xed5   :  { %3008 = vtanh.f32 %v2008_v3  ;;  %v2268_v3 = vld [vmem:[#allocation9 + $0x30] sm:$0xff] }
 0xed6   :  { %3010 = vtanh.f32 %v2120_v18  ;;  %v2844_v9 = vpack.c.bf16 %v2269_v4, %v2268_v3 }
 0xeda   :  { %v3003_v28 = vpop.eup %3002 }
 0xedb   :  { %v3005_v34 = vpop.eup %3004  ;;  %v2018_v58 = vadd.f32 1.0, %v3003_v28 }
 0xedc   :  { %v2019_v21 = vadd.f32 1.0, %v3005_v34  ;;  %v2414_v34 = vld [vmem:[%s3820_s10] ss:$0 sm:$0xff] }
 0xede   :  { %v3007_v25 = vpop.eup %3006  ;;  %3012 = vrcp.f32 %v2019_v21 }
 0xedf   :  { %3014 = vrcp.f32 %v2018_v58  ;;  %v2125_v26 = vadd.f32 1.0, %v3007_v25  ;;  %v3009_v32 = vpop.eup %3008 }
 0xee0   :  { %v3011_v33 = vpop.eup %3010 }
 0xee1   :  { %3016 = vrcp.f32 %v2125_v26  ;;  %v2135_v5 = vrot.slane %v3011_v33, %v3380_v56 }
 0xee3   :  { %v2136_v10 = vcombine.high %v2135_v5, %v2135_v5 }
 0xee8   :  { %v3013_v37 = vpop.eup %3012 }
 0xee9   :  { %v3015_v42 = vpop.eup %3014  ;;  %v2025_v35 = vsel %vm441_vm5, %v3009_v32, %v3013_v37 }
 0xeea   :  { %v2027_v2 = vmul.f32 %v3015_v42, %v2025_v35 }
 0xeeb   :  { %v3017_v7 = vpop.eup %3016 }
 0xeec   :  { %2029 = vrot.lane.b32.xlu1 %v2027_v2, %s3163_s4  ;;  %v2146_v8 = vrot.slane %v3017_v7, %v3380_v56  ;;  %v2026_v56 = vmul.f32 %v3015_v42, %v3751_v63 }
 0xeee   :  { %v2147_v12 = vcombine.high %v2146_v8, %v2146_v8  ;;  %v2152_v19 = vmul.f32 %v2146_v8, %v3746_v50 }
 0xef0   :  { %v2151_v41 = vsel %vm441_vm5, %v2136_v10, %v2147_v12 }
 0xef1   :  { %v2153_v52 = vmul.f32 %v2151_v41, %v2146_v8 }
 0xef3   :  { %2155 = vrot.lane.b32.xlu0 %v2153_v52, %s3163_s4 }
 0xf5e   :  { %v2030_v36 = vpop.permute.xlu1 %2029 }
 0xf5f   :  { %v2032_v38 = vadd.f32 %v2030_v36, %v2026_v56 }
 0xf65   :  { %v2156_v20 = vpop.permute.xlu0 %2155 }
 0xf66   :  { %v2158_v22 = vadd.f32 %v2156_v20, %v2152_v19 }
 0xf68   :  { %3018 = vtanh.f32 %v2158_v22 }
 0xf69   :  { %3020 = vtanh.f32 %v2032_v38 }
 0xf72   :  { %v3019_v23 = vpop.eup %3018 }
 0xf73   :  { %v2160_v31 = vmul.f32 %v3019_v23, %v2151_v41  ;;  %v3021_v62 = vpop.eup %3020 }
 0xf74   :  { %v2034_v6 = vmul.f32 %v3021_v62, %v2025_v35 }
 0xf75   :  { %2162 = vrot.lane.b32.xlu0 %v2160_v31, %s3163_s4 }
 0xfe7   :  { %v2163_v40 = vpop.permute.xlu0 %2162 }
 0xfe8   :  { %v2165_v44 = vsel %vm445_vm6, %v2163_v40, %v2034_v6 }
 0xfe9   :  { %2231 = vmatmul.mubr.f32.vlgmr.msra.gmra.mrb[16].mxu1 %v2165_v44 }
0x10bc   :  { %v2232_v45 = vpop.f32.mrb[16].mxu1 }
0x10bd   :  { %v2233_v30 = vadd.f32 %v2232_v45, %v3501_v15  ;;  %v2234_v39 = vpop.f32.mrb[17].mxu1 }
0x10be   :  { %v2235_v46 = vadd.f32 %v2234_v39, %v3497_v13  ;;  %v2262_v13 = vld [vmem:[#allocation9] sm:$0xff] }
0x10bf   :  { %v2412_v49 = vmul.f32 -1.442695, %v2233_v30  ;;  %v2835_v48 = vpack.c.bf16 %v2263_v17, %v2262_v13 }
0x10c0   :  { %v2413_v14 = vmul.f32 -1.442695, %v2235_v46 }
0x10c1   :  { %3022 = vpow2.f32 %v2412_v49  ;;  %2836 = vmatpush3.bf16.msra.mxu0 %v2835_v48 }
0x10c2   :  { %3024 = vpow2.f32 %v2413_v14  ;;  %2837 = vmatprep.subr.bf16.mxu0 %v3164_v47 }
0x10c3   :  { %3026 = vtanh.f32 %v2235_v46 }
0x10c5   :  { %2839 = vmatpush3.bf16.msra.mxu0 %v2838_v54 }
0x10c6   :  { %2840 = vmatprep.subr.bf16.mxu0 %v3164_v47 }
0x10c9   :  { %2842 = vmatpush3.bf16.msra.mxu0 %v2841_v27 }
0x10ca   :  { %2843 = vmatprep.subr.bf16.mxu0 %v3164_v47 }
0x10cb   :  { %v3023_v50 = vpop.eup %3022 }
0x10cc   :  { %v3025_v51 = vpop.eup %3024  ;;  %v2245_v55 = vadd.f32 1.0, %v3023_v50 }
0x10cd   :  { %v2246_v57 = vadd.f32 1.0, %v3025_v51  ;;  %v3027_v59 = vpop.eup %3026  ;;  %2845 = vmatpush3.bf16.msra.mxu0 %v2844_v9 }
0x10cf   :  { %3028 = vrcp.f32 %v2246_v57 }
0x10d0   :  { %3030 = vrcp.f32 %v2245_v55 }
0x10d9   :  { %v3029_v63 = vpop.eup %3028 }
0x10da   :  { %v3031_v1 = vpop.eup %3030  ;;  %v2252_v15 = vsel %vm441_vm5, %v3027_v59, %v3029_v63 }
0x10db   :  { %v2254_v43 = vmul.f32 %v3031_v1, %v2252_v15  ;;  %v2253_v11 = vmul.f32 %v3031_v1, %v2032_v38 }
0x10dd   :  { %2256 = vrot.lane.b32.xlu1 %v2254_v43, %s3163_s4 }
0x114f   :  { %v2257_v16 = vpop.permute.xlu1 %2256 }
0x1150   :  { %v2259_v18 = vadd.f32 %v2257_v16, %v2253_v11 }
0x1152   :  { %3032 = vtanh.f32 %v2259_v18 }
0x115c   :  { %v3033_v24 = vpop.eup %3032 }
0x115d   :  { %v2261_v0 = vmul.f32 %v3033_v24, %v2252_v15 }
0x115f   :  { %2278 = vrot.lane.b32.xlu0 %v2261_v0, %s3163_s4 }
0x11d1   :  { %v2279_v28 = vpop.permute.xlu0 %2278 }
0x11d2   :  { %2442 = vmatmul.mubr.msk.f32.vlgmr.msra.gmra.mrb[18].mxu0 %vm445_vm6, %v2279_v28 }
0x12a5   :  { %v2348_v58 = vpop.f32.mrb[18].mxu0 }
0x12a6   :  { %v2349_v21 = vadd.f32 %v2414_v34, %v2348_v58  ;;  %v2443_v25 = vpop.f32.mrb[19].mxu0 }
0x12a8   :  { %2352 = vst [vmem:[#allocation11] sm:$0x3] %v2349_v21 }
0x12a9   :  { %3133 = shalt.err (!%p3130_p8)
}
0x12aa   :  { %s3134_s28 = scalar_lea.hbm %s3821_s11, 32 }
0x12ab   :  { %p3135_p9 = scmp.ne.s32.totalorder %s3821_s11, %s3134_s28  ;;  %p3138_p10 = scmp.lt.u32.totalorder %s3134_s28, %s3821_s11 }
0x12ad   :  { %p3140_p11 = pnand %p3138_p10, %p3135_p9 }
0x12af   :  { %3143 = shalt.err (!%p3140_p11)
}
0x12b0   :  { %2362 = dma.vmem_to_hbm [thread:$0]  %s2360_s6, 32, %s3821_s11, [#allocation5]  }
0x12b1   :  { %3150 = dma.done.wait [#allocation5], 32  }
0x12b2   :  { %3151 = vsyncadd [#allocation5], 4294967264 }
0x12b3   :  { %2366 = vsyncpa [#allocation4], 1 }
0x12b4   :  { %2367 = vsyncpa [#allocation7], 1 }
0x12b5   :  { %2368 = vsyncpa [#allocation10], 1 }
0x12b6   :  { %2369 = vsyncpa [#allocation5], 1 }

</bundles_post_ra>
